<compile_context>
chip_gen: v5e
topology: v5e:2x2
jax: 0.10.0
libtpu: 0.0.40
codegen_flags: <defaults>
</compile_context>

<pallas_src>
import jax
import jax.numpy as jnp
from jax import lax
from jax.experimental import pallas as pl
from jax.experimental.pallas import tpu as pltpu  # noqa: F401  (needed when scaling: CompilerParams / VMEM scratch)


# ----------------------------- config ---------------------------------------
VOCAB = 64
HIDDEN = 32
NUM_HEADS = 4
NUM_KV_HEADS = 2
HEAD_DIM = 8
INTERMEDIATE = 64
NUM_LAYERS = 2
RMS_EPS = 1e-6
ROPE_THETA = 10000.0
SEQ = 8

Q_SIZE = NUM_HEADS * HEAD_DIM            # 32
KV_SIZE = NUM_KV_HEADS * HEAD_DIM        # 16
QKV_SIZE = Q_SIZE + 2 * KV_SIZE          # 64
GROUP = NUM_HEADS // NUM_KV_HEADS        # 2
SCALE = HEAD_DIM ** -0.5
HALF = HEAD_DIM // 2
VOCAB_PAD = 128                          # lane-dense output (unmasked store)


# --------------------------- fused forward kernel ----------------------------
def _arcee_fwd_kernel(x_ref, rope_ref, ln_ref, w_in_ref, w_out_ref, lm_head_ref,
                      logits_ref):
    T = x_ref.shape[0]

    def rmsnorm(v):
        return v * lax.rsqrt(jnp.mean(v * v, axis=-1, keepdims=True) + RMS_EPS)

    # ---- RoPE tables (precomputed in wrapper): cols [cos(HALF) | sin(HALF)],
    # rows = token positions tiled GROUP times (for the row-stacked q tile).
    cos_q = rope_ref[:, :HALF]            # [GROUP*T, HALF]
    sin_q = rope_ref[:, HALF:]
    cos_k = rope_ref[:T, :HALF]           # [T, HALF]
    sin_k = rope_ref[:T, HALF:]

    def rope(x, cos, sin):                # neox rotate-half, elementwise only
        x1 = x[:, :HALF]
        x2 = x[:, HALF:]
        return jnp.concatenate([x1 * cos - x2 * sin, x2 * cos + x1 * sin],
                               axis=-1)

    # ---- causal mask for the group-stacked score tile, built ONCE ----
    row = lax.broadcasted_iota(jnp.int32, (GROUP * T, T), 0) % T
    col = lax.broadcasted_iota(jnp.int32, (GROUP * T, T), 1)
    causal = col <= row
    neg = jnp.float32(-1e30)

    hidden = x_ref[...]                   # [T, H] residual stream (VMEM-resident)
    residual = jnp.zeros_like(hidden)

    for l in range(NUM_LAYERS):           # static unroll: weights stay in VMEM
        ln = ln_ref[l]                    # [2, H]   (input_ln | post_ln)
        w_in = w_in_ref[l]                # [H, QKV_SIZE + INTERMEDIATE] = [32, 128]
        w_out = w_out_ref[l]              # [Q_SIZE + INTERMEDIATE, H]   = [96, 32]
        qkv_w = w_in[:, :QKV_SIZE]
        up_w = w_in[:, QKV_SIZE:]
        o_w = w_out[:Q_SIZE, :]
        down_w = w_out[Q_SIZE:, :]

        # ---- residual add + input RMSNorm (fused, stays on-chip) ----
        z = hidden + residual
        residual = z
        normed = rmsnorm(z) * ln[0:1, :]

        # ---- fused qkv projection ----
        qkv = jnp.dot(normed, qkv_w, preferred_element_type=jnp.float32)

        # ---- causal GQA attention, GROUP query heads merged per kv head ----
        head_outs = []
        for g in range(NUM_KV_HEADS):
            q_parts = [
                qkv[:, (g * GROUP + j) * HEAD_DIM:(g * GROUP + j + 1) * HEAD_DIM]
                for j in range(GROUP)
            ]
            q_g = jnp.concatenate(q_parts, axis=0)          # [GROUP*T, D]
            k_g = qkv[:, Q_SIZE + g * HEAD_DIM:Q_SIZE + (g + 1) * HEAD_DIM]
            v_g = qkv[:, Q_SIZE + KV_SIZE + g * HEAD_DIM:
                      Q_SIZE + KV_SIZE + (g + 1) * HEAD_DIM]

            q_g = rope(q_g, cos_q, sin_q)                   # elementwise RoPE
            k_g = rope(k_g, cos_k, sin_k)

            # contract head_dim of q against head_dim of k (no explicit k.T)
            s = lax.dot_general(q_g, k_g, (((1,), (1,)), ((), ())),
                                preferred_element_type=jnp.float32) * SCALE
            s = jnp.where(causal, s, neg)
            m = jnp.max(s, axis=-1, keepdims=True)
            p = jnp.exp(s - m)
            p = p * pl.reciprocal(jnp.sum(p, axis=-1, keepdims=True), approx=True)
            o_g = jnp.dot(p, v_g, preferred_element_type=jnp.float32)  # [GROUP*T, D]
            head_outs += [o_g[j * T:(j + 1) * T, :] for j in range(GROUP)]

        attn = jnp.concatenate(head_outs, axis=-1)          # [T, Q_SIZE]
        attn_proj = jnp.dot(attn, o_w, preferred_element_type=jnp.float32)

        # ---- residual add + post-attention RMSNorm ----
        z2 = attn_proj + residual
        residual = z2
        normed2 = rmsnorm(z2) * ln[1:2, :]

        # ---- MLP: up_proj -> relu^2 -> down_proj ----
        up = jnp.dot(normed2, up_w, preferred_element_type=jnp.float32)
        up = jnp.maximum(up, 0.0)
        hidden = jnp.dot(up * up, down_w, preferred_element_type=jnp.float32)

    # ---- final add + RMSNorm (+ lm_head with folded norm weight), last token ----
    z_last = hidden[T - 1:T, :] + residual[T - 1:T, :]      # [1, H]
    logits_ref[...] = jnp.dot(rmsnorm(z_last), lm_head_ref[...],
                              preferred_element_type=jnp.float32)


# ------------------------------ RoPE table -----------------------------------
def _rope_table(positions):
    """[GROUP*T, 2*HALF] table: cols = [cos | sin], rows = positions tiled
    GROUP times so it broadcasts directly over the group-stacked q tile."""
    inv_freq = 1.0 / (ROPE_THETA ** (jnp.arange(0, HEAD_DIM, 2,
                                                dtype=jnp.float32) / HEAD_DIM))
    ang = positions.astype(jnp.float32)[:, None] * inv_freq[None, :]   # [T, HALF]
    cos = jnp.cos(ang)
    sin = jnp.sin(ang)
    return jnp.concatenate([jnp.tile(cos, (GROUP, 1)),
                            jnp.tile(sin, (GROUP, 1))], axis=-1)


# ------------------------------- model ----------------------------------------
def init_params(key):
    def rnd(key, shape, scale=0.05):
        return scale * jax.random.normal(key, shape, dtype=jnp.float32)

    keys = jax.random.split(key, 4 + NUM_LAYERS)
    params = {
        "embed": rnd(keys[0], (VOCAB, HIDDEN), 0.1),
        "final_norm": 1.0 + rnd(keys[2], (HIDDEN,), 0.1),
        "lm_head": rnd(keys[1], (HIDDEN, VOCAB), 0.1),
        "layers": [],
    }
    for i in range(NUM_LAYERS):
        lk = jax.random.split(keys[4 + i], 6)
        params["layers"].append({
            "input_ln": 1.0 + rnd(lk[4], (HIDDEN,), 0.1),
            "post_ln": 1.0 + rnd(lk[5], (HIDDEN,), 0.1),
            "qkv_w": rnd(lk[0], (HIDDEN, QKV_SIZE)),
            "o_w": rnd(lk[1], (Q_SIZE, HIDDEN)),
            "up_w": rnd(lk[2], (HIDDEN, INTERMEDIATE)),
            "down_w": rnd(lk[3], (INTERMEDIATE, HIDDEN)),
        })
    return params


def arcee_forward(params, input_ids, positions):
    x = params["embed"][input_ids]                    # embedding gather (glue)
    rope_tab = _rope_table(positions)                 # [GROUP*T, 2*HALF]

    layers = params["layers"]
    # packed per-layer weight tiles (fewer, lane-dense DMAs)
    ln_w = jnp.stack([jnp.stack([lp["input_ln"], lp["post_ln"]])
                      for lp in layers])                                  # [L, 2, H]
    w_in = jnp.stack([jnp.concatenate([lp["qkv_w"], lp["up_w"]], axis=-1)
                      for lp in layers])                                  # [L, H, 128]
    w_out = jnp.stack([jnp.concatenate([lp["o_w"], lp["down_w"]], axis=0)
                       for lp in layers])                                 # [L, 96, H]
    # fold the final RMSNorm weight into lm_head rows; pad cols to 128 lanes
    lm_head = params["final_norm"][:, None] * params["lm_head"]
    lm_head = jnp.pad(lm_head, ((0, 0), (0, VOCAB_PAD - VOCAB)))          # [H, 128]

    logits_pad = pl.pallas_call(
        _arcee_fwd_kernel,
        out_shape=jax.ShapeDtypeStruct((1, VOCAB_PAD), jnp.float32),
        # No grid / BlockSpecs: single invocation, every operand is DMA'd
        # HBM->VMEM exactly once and stays resident across all layers.
    )(x, rope_tab, ln_w, w_in, w_out, lm_head)
    return logits_pad[:, :VOCAB]


# --------------------------- pure-JAX reference --------------------------------
def _reference_forward(params, input_ids, positions):
    x = params["embed"][input_ids]
    inv_freq = 1.0 / (ROPE_THETA ** (jnp.arange(0, HEAD_DIM, 2,
                                                dtype=jnp.float32) / HEAD_DIM))
    ang = positions.astype(jnp.float32)[:, None] * inv_freq[None, :]
    cos = jnp.cos(ang)[:, None, :]
    sin = jnp.sin(ang)[:, None, :]

    def rope(t):  # [T, nH, D], neox style
        t1, t2 = t[..., :HALF], t[..., HALF:]
        return jnp.concatenate([t1 * cos - t2 * sin, t2 * cos + t1 * sin], axis=-1)

    def rmsnorm(v, w):
        return v * lax.rsqrt(jnp.mean(v * v, -1, keepdims=True) + RMS_EPS) * w

    T = x.shape[0]
    hidden, residual = x, jnp.zeros_like(x)
    mask = jnp.tril(jnp.ones((T, T), bool))
    for lp in params["layers"]:
        z = hidden + residual
        residual = z
        n = rmsnorm(z, lp["input_ln"])
        qkv = n @ lp["qkv_w"]
        q = rope(qkv[:, :Q_SIZE].reshape(T, NUM_HEADS, HEAD_DIM))
        k = rope(qkv[:, Q_SIZE:Q_SIZE + KV_SIZE].reshape(T, NUM_KV_HEADS, HEAD_DIM))
        v = qkv[:, Q_SIZE + KV_SIZE:].reshape(T, NUM_KV_HEADS, HEAD_DIM)
        k = jnp.repeat(k, GROUP, axis=1)
        v = jnp.repeat(v, GROUP, axis=1)
        s = jnp.einsum("qhd,khd->hqk", q, k) * SCALE
        s = jnp.where(mask[None], s, -1e30)
        p = jax.nn.softmax(s, axis=-1)
        o = jnp.einsum("hqk,khd->qhd", p, v).reshape(T, Q_SIZE)
        hidden = o @ lp["o_w"]
        z = hidden + residual
        residual = z
        n = rmsnorm(z, lp["post_ln"])
        h = jnp.maximum(n @ lp["up_w"], 0.0)
        hidden = (h * h) @ lp["down_w"]
    final = rmsnorm(hidden + residual, params["final_norm"])
    return final[-1:, :] @ params["lm_head"]


if __name__ == "__main__":
    key = jax.random.PRNGKey(0)
    pkey, ikey = jax.random.split(key)
    params = init_params(pkey)

    input_ids = jax.random.randint(ikey, (SEQ,), 0, VOCAB, dtype=jnp.int32)
    positions = jnp.arange(SEQ, dtype=jnp.int32)

    fwd = jax.jit(arcee_forward)
    logits = jax.block_until_ready(fwd(params, input_ids, positions))

    assert logits.shape == (1, VOCAB)
    assert bool(jnp.all(jnp.isfinite(logits)))

    ref = _reference_forward(params, input_ids, positions)
    max_err = float(jnp.max(jnp.abs(logits - ref)))
    assert bool(jnp.allclose(logits, ref, rtol=5e-3, atol=5e-3)), (
        "max abs err = %g" % max_err)

    print("KERNEL_OK")
</pallas_src>

<mosaic_0001>
module attributes {stable_mosaic.version = 11 : i64} {
  func.func @_arcee_fwd_kernel(%arg0: memref<8x32xf32, #tpu.memory_space<vmem>>, %arg1: memref<16x8xf32, #tpu.memory_space<vmem>>, %arg2: memref<2x2x32xf32, #tpu.memory_space<vmem>>, %arg3: memref<2x32x128xf32, #tpu.memory_space<vmem>>, %arg4: memref<2x96x32xf32, #tpu.memory_space<vmem>>, %arg5: memref<32x128xf32, #tpu.memory_space<vmem>>, %arg6: memref<1x128xf32, #tpu.memory_space<vmem>>) attributes {dimension_semantics = [], scalar_prefetch = 0 : i64, scratch_operands = 0 : i64, tpu.core_type = #tpu.core_type<tc>} {
    %c0 = arith.constant 0 : index
    %c0_0 = arith.constant 0 : index
    %0 = vector.load %arg1[%c0, %c0_0] : memref<16x8xf32, #tpu.memory_space<vmem>>, vector<16x4xf32>
    %c0_1 = arith.constant 0 : index
    %c4 = arith.constant 4 : index
    %1 = vector.load %arg1[%c0_1, %c4] : memref<16x8xf32, #tpu.memory_space<vmem>>, vector<16x4xf32>
    %c0_2 = arith.constant 0 : index
    %c0_3 = arith.constant 0 : index
    %2 = vector.load %arg1[%c0_2, %c0_3] : memref<16x8xf32, #tpu.memory_space<vmem>>, vector<8x4xf32>
    %c0_4 = arith.constant 0 : index
    %c4_5 = arith.constant 4 : index
    %3 = vector.load %arg1[%c0_4, %c4_5] : memref<16x8xf32, #tpu.memory_space<vmem>>, vector<8x4xf32>
    %4 = tpu.iota {dimensions = array<i32: 0>} : vector<16x8xi32>
    %c8_i32 = arith.constant 8 : i32
    %c0_i32 = arith.constant 0 : i32
    %5 = arith.cmpi eq, %c8_i32, %c0_i32 : i32
    %c1_i32 = arith.constant 1 : i32
    %6 = arith.select %5, %c1_i32, %c8_i32 : i32
    %7 = vector.broadcast %6 : i32 to vector<16x8xi32>
    %8 = arith.remsi %4, %7 : vector<16x8xi32>
    %c0_i32_6 = arith.constant 0 : i32
    %9 = vector.broadcast %c0_i32_6 : i32 to vector<16x8xi32>
    %10 = arith.cmpi ne, %8, %9 : vector<16x8xi32>
    %c0_i32_7 = arith.constant 0 : i32
    %11 = vector.broadcast %c0_i32_7 : i32 to vector<16x8xi32>
    %12 = arith.cmpi slt, %8, %11 : vector<16x8xi32>
    %c0_i32_8 = arith.constant 0 : i32
    %13 = arith.cmpi slt, %6, %c0_i32_8 : i32
    %14 = vector.broadcast %13 : i1 to vector<16x8xi1>
    %15 = vector.broadcast %14 : vector<16x8xi1> to vector<16x8xi1>
    %16 = arith.xori %12, %15 : vector<16x8xi1>
    %17 = arith.andi %16, %10 : vector<16x8xi1>
    %18 = vector.broadcast %6 : i32 to vector<16x8xi32>
    %19 = arith.addi %8, %18 : vector<16x8xi32>
    %20 = arith.select %17, %19, %8 : vector<16x8xi1>, vector<16x8xi32>
    %21 = tpu.iota {dimensions = array<i32: 1>} : vector<16x8xi32>
    %22 = arith.cmpi sle, %21, %20 : vector<16x8xi32>
    %c0_9 = arith.constant 0 : index
    %c0_10 = arith.constant 0 : index
    %23 = vector.load %arg0[%c0_9, %c0_10] : memref<8x32xf32, #tpu.memory_space<vmem>>, vector<8x32xf32>
    %cst = arith.constant 0.000000e+00 : f32
    %24 = vector.broadcast %cst : f32 to vector<8x32xf32>
    %c0_11 = arith.constant 0 : index
    %c0_12 = arith.constant 0 : index
    %c0_13 = arith.constant 0 : index
    %25 = vector.load %arg2[%c0_11, %c0_12, %c0_13] : memref<2x2x32xf32, #tpu.memory_space<vmem>>, vector<1x2x32xf32>
    %26 = vector.shape_cast %25 : vector<1x2x32xf32> to vector<2x32xf32>
    %c0_14 = arith.constant 0 : index
    %c0_15 = arith.constant 0 : index
    %c0_16 = arith.constant 0 : index
    %27 = vector.load %arg3[%c0_14, %c0_15, %c0_16] : memref<2x32x128xf32, #tpu.memory_space<vmem>>, vector<1x32x128xf32>
    %28 = vector.shape_cast %27 : vector<1x32x128xf32> to vector<32x128xf32>
    %c0_17 = arith.constant 0 : index
    %c0_18 = arith.constant 0 : index
    %c0_19 = arith.constant 0 : index
    %29 = vector.load %arg4[%c0_17, %c0_18, %c0_19] : memref<2x96x32xf32, #tpu.memory_space<vmem>>, vector<1x96x32xf32>
    %30 = vector.shape_cast %29 : vector<1x96x32xf32> to vector<96x32xf32>
    %31 = vector.extract_strided_slice %28 {offsets = [0, 0], sizes = [32, 64], strides = [1, 1]} : vector<32x128xf32> to vector<32x64xf32>
    %32 = vector.extract_strided_slice %28 {offsets = [0, 64], sizes = [32, 64], strides = [1, 1]} : vector<32x128xf32> to vector<32x64xf32>
    %33 = vector.extract_strided_slice %30 {offsets = [0, 0], sizes = [32, 32], strides = [1, 1]} : vector<96x32xf32> to vector<32x32xf32>
    %34 = vector.extract_strided_slice %30 {offsets = [32, 0], sizes = [64, 32], strides = [1, 1]} : vector<96x32xf32> to vector<64x32xf32>
    %35 = arith.addf %23, %24 : vector<8x32xf32>
    %36 = arith.mulf %35, %35 : vector<8x32xf32>
    %cst_20 = arith.constant dense<0.000000e+00> : vector<8xf32>
    %37 = vector.multi_reduction <add>, %36, %cst_20 [1] : vector<8x32xf32> to vector<8xf32>
    %38 = vector.shape_cast %37 : vector<8xf32> to vector<8x1xf32>
    %cst_21 = arith.constant 3.200000e+01 : f32
    %39 = vector.broadcast %cst_21 : f32 to vector<8x1xf32>
    %40 = arith.divf %38, %39 : vector<8x1xf32>
    %cst_22 = arith.constant 9.99999997E-7 : f32
    %41 = vector.broadcast %cst_22 : f32 to vector<8x1xf32>
    %42 = arith.addf %40, %41 : vector<8x1xf32>
    %43 = math.rsqrt %42 : vector<8x1xf32>
    %44 = vector.broadcast %43 : vector<8x1xf32> to vector<8x32xf32>
    %45 = arith.mulf %35, %44 : vector<8x32xf32>
    %46 = vector.extract_strided_slice %26 {offsets = [0, 0], sizes = [1, 32], strides = [1, 1]} : vector<2x32xf32> to vector<1x32xf32>
    %47 = vector.broadcast %46 : vector<1x32xf32> to vector<8x32xf32>
    %48 = arith.mulf %45, %47 : vector<8x32xf32>
    %cst_23 = arith.constant dense<0.000000e+00> : vector<8x64xf32>
    %49 = tpu.matmul %48, %31, %cst_23 {dimension_numbers = #tpu.dot_dimension_numbers<[1], [0], [0], [1], [0, 0, 1, 1], [], []>} : vector<8x32xf32>, vector<32x64xf32>, vector<8x64xf32> -> vector<8x64xf32>
    %50 = vector.extract_strided_slice %49 {offsets = [0, 0], sizes = [8, 8], strides = [1, 1]} : vector<8x64xf32> to vector<8x8xf32>
    %51 = vector.extract_strided_slice %49 {offsets = [0, 8], sizes = [8, 8], strides = [1, 1]} : vector<8x64xf32> to vector<8x8xf32>
    %52 = tpu.concatenate %50, %51 in 0 : vector<8x8xf32>, vector<8x8xf32> -> vector<16x8xf32>
    %53 = vector.extract_strided_slice %49 {offsets = [0, 32], sizes = [8, 8], strides = [1, 1]} : vector<8x64xf32> to vector<8x8xf32>
    %54 = vector.extract_strided_slice %49 {offsets = [0, 48], sizes = [8, 8], strides = [1, 1]} : vector<8x64xf32> to vector<8x8xf32>
    %55 = vector.extract_strided_slice %52 {offsets = [0, 0], sizes = [16, 4], strides = [1, 1]} : vector<16x8xf32> to vector<16x4xf32>
    %56 = vector.extract_strided_slice %52 {offsets = [0, 4], sizes = [16, 4], strides = [1, 1]} : vector<16x8xf32> to vector<16x4xf32>
    %57 = arith.mulf %55, %0 : vector<16x4xf32>
    %58 = arith.mulf %56, %1 : vector<16x4xf32>
    %59 = arith.subf %57, %58 : vector<16x4xf32>
    %60 = arith.mulf %56, %0 : vector<16x4xf32>
    %61 = arith.mulf %55, %1 : vector<16x4xf32>
    %62 = arith.addf %60, %61 : vector<16x4xf32>
    %63 = tpu.concatenate %59, %62 in 1 : vector<16x4xf32>, vector<16x4xf32> -> vector<16x8xf32>
    %64 = vector.extract_strided_slice %53 {offsets = [0, 0], sizes = [8, 4], strides = [1, 1]} : vector<8x8xf32> to vector<8x4xf32>
    %65 = vector.extract_strided_slice %53 {offsets = [0, 4], sizes = [8, 4], strides = [1, 1]} : vector<8x8xf32> to vector<8x4xf32>
    %66 = arith.mulf %64, %2 : vector<8x4xf32>
    %67 = arith.mulf %65, %3 : vector<8x4xf32>
    %68 = arith.subf %66, %67 : vector<8x4xf32>
    %69 = arith.mulf %65, %2 : vector<8x4xf32>
    %70 = arith.mulf %64, %3 : vector<8x4xf32>
    %71 = arith.addf %69, %70 : vector<8x4xf32>
    %72 = tpu.concatenate %68, %71 in 1 : vector<8x4xf32>, vector<8x4xf32> -> vector<8x8xf32>
    %cst_24 = arith.constant dense<0.000000e+00> : vector<16x8xf32>
    %73 = tpu.matmul %63, %72, %cst_24 {dimension_numbers = #tpu.dot_dimension_numbers<[1], [1], [0], [0], [0, 0, 1, 0], [], []>} : vector<16x8xf32>, vector<8x8xf32>, vector<16x8xf32> -> vector<16x8xf32>
    %cst_25 = arith.constant 0.353553385 : f32
    %74 = vector.broadcast %cst_25 : f32 to vector<16x8xf32>
    %75 = arith.mulf %73, %74 : vector<16x8xf32>
    %cst_26 = arith.constant -1.000000e+30 : f32
    %76 = vector.broadcast %cst_26 : f32 to vector<16x8xf32>
    %77 = arith.select %22, %75, %76 : vector<16x8xi1>, vector<16x8xf32>
    %cst_27 = arith.constant dense<0xFF800000> : vector<16xf32>
    %78 = vector.multi_reduction <maximumf>, %77, %cst_27 [1] : vector<16x8xf32> to vector<16xf32>
    %79 = vector.shape_cast %78 : vector<16xf32> to vector<16x1xf32>
    %80 = vector.broadcast %79 : vector<16x1xf32> to vector<16x8xf32>
    %81 = arith.subf %77, %80 : vector<16x8xf32>
    %82 = math.exp %81 : vector<16x8xf32>
    %cst_28 = arith.constant dense<0.000000e+00> : vector<16xf32>
    %83 = vector.multi_reduction <add>, %82, %cst_28 [1] : vector<16x8xf32> to vector<16xf32>
    %84 = vector.shape_cast %83 : vector<16xf32> to vector<16x1xf32>
    %85 = tpu.reciprocal %84 {approx = true} : vector<16x1xf32> -> vector<16x1xf32>
    %86 = vector.broadcast %85 : vector<16x1xf32> to vector<16x8xf32>
    %87 = arith.mulf %82, %86 : vector<16x8xf32>
    %cst_29 = arith.constant dense<0.000000e+00> : vector<16x8xf32>
    %88 = tpu.matmul %87, %54, %cst_29 {dimension_numbers = #tpu.dot_dimension_numbers<[1], [0], [0], [1], [0, 0, 1, 1], [], []>} : vector<16x8xf32>, vector<8x8xf32>, vector<16x8xf32> -> vector<16x8xf32>
    %89 = vector.extract_strided_slice %88 {offsets = [0, 0], sizes = [8, 8], strides = [1, 1]} : vector<16x8xf32> to vector<8x8xf32>
    %90 = vector.extract_strided_slice %88 {offsets = [8, 0], sizes = [8, 8], strides = [1, 1]} : vector<16x8xf32> to vector<8x8xf32>
    %91 = vector.extract_strided_slice %49 {offsets = [0, 16], sizes = [8, 8], strides = [1, 1]} : vector<8x64xf32> to vector<8x8xf32>
    %92 = vector.extract_strided_slice %49 {offsets = [0, 24], sizes = [8, 8], strides = [1, 1]} : vector<8x64xf32> to vector<8x8xf32>
    %93 = tpu.concatenate %91, %92 in 0 : vector<8x8xf32>, vector<8x8xf32> -> vector<16x8xf32>
    %94 = vector.extract_strided_slice %49 {offsets = [0, 40], sizes = [8, 8], strides = [1, 1]} : vector<8x64xf32> to vector<8x8xf32>
    %95 = vector.extract_strided_slice %49 {offsets = [0, 56], sizes = [8, 8], strides = [1, 1]} : vector<8x64xf32> to vector<8x8xf32>
    %96 = vector.extract_strided_slice %93 {offsets = [0, 0], sizes = [16, 4], strides = [1, 1]} : vector<16x8xf32> to vector<16x4xf32>
    %97 = vector.extract_strided_slice %93 {offsets = [0, 4], sizes = [16, 4], strides = [1, 1]} : vector<16x8xf32> to vector<16x4xf32>
    %98 = arith.mulf %96, %0 : vector<16x4xf32>
    %99 = arith.mulf %97, %1 : vector<16x4xf32>
    %100 = arith.subf %98, %99 : vector<16x4xf32>
    %101 = arith.mulf %97, %0 : vector<16x4xf32>
    %102 = arith.mulf %96, %1 : vector<16x4xf32>
    %103 = arith.addf %101, %102 : vector<16x4xf32>
    %104 = tpu.concatenate %100, %103 in 1 : vector<16x4xf32>, vector<16x4xf32> -> vector<16x8xf32>
    %105 = vector.extract_strided_slice %94 {offsets = [0, 0], sizes = [8, 4], strides = [1, 1]} : vector<8x8xf32> to vector<8x4xf32>
    %106 = vector.extract_strided_slice %94 {offsets = [0, 4], sizes = [8, 4], strides = [1, 1]} : vector<8x8xf32> to vector<8x4xf32>
    %107 = arith.mulf %105, %2 : vector<8x4xf32>
    %108 = arith.mulf %106, %3 : vector<8x4xf32>
    %109 = arith.subf %107, %108 : vector<8x4xf32>
    %110 = arith.mulf %106, %2 : vector<8x4xf32>
    %111 = arith.mulf %105, %3 : vector<8x4xf32>
    %112 = arith.addf %110, %111 : vector<8x4xf32>
    %113 = tpu.concatenate %109, %112 in 1 : vector<8x4xf32>, vector<8x4xf32> -> vector<8x8xf32>
    %cst_30 = arith.constant dense<0.000000e+00> : vector<16x8xf32>
    %114 = tpu.matmul %104, %113, %cst_30 {dimension_numbers = #tpu.dot_dimension_numbers<[1], [1], [0], [0], [0, 0, 1, 0], [], []>} : vector<16x8xf32>, vector<8x8xf32>, vector<16x8xf32> -> vector<16x8xf32>
    %cst_31 = arith.constant 0.353553385 : f32
    %115 = vector.broadcast %cst_31 : f32 to vector<16x8xf32>
    %116 = arith.mulf %114, %115 : vector<16x8xf32>
    %cst_32 = arith.constant -1.000000e+30 : f32
    %117 = vector.broadcast %cst_32 : f32 to vector<16x8xf32>
    %118 = arith.select %22, %116, %117 : vector<16x8xi1>, vector<16x8xf32>
    %cst_33 = arith.constant dense<0xFF800000> : vector<16xf32>
    %119 = vector.multi_reduction <maximumf>, %118, %cst_33 [1] : vector<16x8xf32> to vector<16xf32>
    %120 = vector.shape_cast %119 : vector<16xf32> to vector<16x1xf32>
    %121 = vector.broadcast %120 : vector<16x1xf32> to vector<16x8xf32>
    %122 = arith.subf %118, %121 : vector<16x8xf32>
    %123 = math.exp %122 : vector<16x8xf32>
    %cst_34 = arith.constant dense<0.000000e+00> : vector<16xf32>
    %124 = vector.multi_reduction <add>, %123, %cst_34 [1] : vector<16x8xf32> to vector<16xf32>
    %125 = vector.shape_cast %124 : vector<16xf32> to vector<16x1xf32>
    %126 = tpu.reciprocal %125 {approx = true} : vector<16x1xf32> -> vector<16x1xf32>
    %127 = vector.broadcast %126 : vector<16x1xf32> to vector<16x8xf32>
    %128 = arith.mulf %123, %127 : vector<16x8xf32>
    %cst_35 = arith.constant dense<0.000000e+00> : vector<16x8xf32>
    %129 = tpu.matmul %128, %95, %cst_35 {dimension_numbers = #tpu.dot_dimension_numbers<[1], [0], [0], [1], [0, 0, 1, 1], [], []>} : vector<16x8xf32>, vector<8x8xf32>, vector<16x8xf32> -> vector<16x8xf32>
    %130 = vector.extract_strided_slice %129 {offsets = [0, 0], sizes = [8, 8], strides = [1, 1]} : vector<16x8xf32> to vector<8x8xf32>
    %131 = vector.extract_strided_slice %129 {offsets = [8, 0], sizes = [8, 8], strides = [1, 1]} : vector<16x8xf32> to vector<8x8xf32>
    %132 = tpu.concatenate %89, %90, %130, %131 in 1 : vector<8x8xf32>, vector<8x8xf32>, vector<8x8xf32>, vector<8x8xf32> -> vector<8x32xf32>
    %cst_36 = arith.constant dense<0.000000e+00> : vector<8x32xf32>
    %133 = tpu.matmul %132, %33, %cst_36 {dimension_numbers = #tpu.dot_dimension_numbers<[1], [0], [0], [1], [0, 0, 1, 1], [], []>} : vector<8x32xf32>, vector<32x32xf32>, vector<8x32xf32> -> vector<8x32xf32>
    %134 = arith.addf %133, %35 : vector<8x32xf32>
    %135 = arith.mulf %134, %134 : vector<8x32xf32>
    %cst_37 = arith.constant dense<0.000000e+00> : vector<8xf32>
    %136 = vector.multi_reduction <add>, %135, %cst_37 [1] : vector<8x32xf32> to vector<8xf32>
    %137 = vector.shape_cast %136 : vector<8xf32> to vector<8x1xf32>
    %cst_38 = arith.constant 3.200000e+01 : f32
    %138 = vector.broadcast %cst_38 : f32 to vector<8x1xf32>
    %139 = arith.divf %137, %138 : vector<8x1xf32>
    %cst_39 = arith.constant 9.99999997E-7 : f32
    %140 = vector.broadcast %cst_39 : f32 to vector<8x1xf32>
    %141 = arith.addf %139, %140 : vector<8x1xf32>
    %142 = math.rsqrt %141 : vector<8x1xf32>
    %143 = vector.broadcast %142 : vector<8x1xf32> to vector<8x32xf32>
    %144 = arith.mulf %134, %143 : vector<8x32xf32>
    %145 = vector.extract_strided_slice %26 {offsets = [1, 0], sizes = [1, 32], strides = [1, 1]} : vector<2x32xf32> to vector<1x32xf32>
    %146 = vector.broadcast %145 : vector<1x32xf32> to vector<8x32xf32>
    %147 = arith.mulf %144, %146 : vector<8x32xf32>
    %cst_40 = arith.constant dense<0.000000e+00> : vector<8x64xf32>
    %148 = tpu.matmul %147, %32, %cst_40 {dimension_numbers = #tpu.dot_dimension_numbers<[1], [0], [0], [1], [0, 0, 1, 1], [], []>} : vector<8x32xf32>, vector<32x64xf32>, vector<8x64xf32> -> vector<8x64xf32>
    %cst_41 = arith.constant 0.000000e+00 : f32
    %149 = vector.broadcast %cst_41 : f32 to vector<8x64xf32>
    %150 = arith.maximumf %148, %149 : vector<8x64xf32>
    %151 = arith.mulf %150, %150 : vector<8x64xf32>
    %cst_42 = arith.constant dense<0.000000e+00> : vector<8x32xf32>
    %152 = tpu.matmul %151, %34, %cst_42 {dimension_numbers = #tpu.dot_dimension_numbers<[1], [0], [0], [1], [0, 0, 1, 1], [], []>} : vector<8x64xf32>, vector<64x32xf32>, vector<8x32xf32> -> vector<8x32xf32>
    %c1 = arith.constant 1 : index
    %c0_43 = arith.constant 0 : index
    %c0_44 = arith.constant 0 : index
    %153 = vector.load %arg2[%c1, %c0_43, %c0_44] : memref<2x2x32xf32, #tpu.memory_space<vmem>>, vector<1x2x32xf32>
    %154 = vector.shape_cast %153 : vector<1x2x32xf32> to vector<2x32xf32>
    %c1_45 = arith.constant 1 : index
    %c0_46 = arith.constant 0 : index
    %c0_47 = arith.constant 0 : index
    %155 = vector.load %arg3[%c1_45, %c0_46, %c0_47] : memref<2x32x128xf32, #tpu.memory_space<vmem>>, vector<1x32x128xf32>
    %156 = vector.shape_cast %155 : vector<1x32x128xf32> to vector<32x128xf32>
    %c1_48 = arith.constant 1 : index
    %c0_49 = arith.constant 0 : index
    %c0_50 = arith.constant 0 : index
    %157 = vector.load %arg4[%c1_48, %c0_49, %c0_50] : memref<2x96x32xf32, #tpu.memory_space<vmem>>, vector<1x96x32xf32>
    %158 = vector.shape_cast %157 : vector<1x96x32xf32> to vector<96x32xf32>
    %159 = vector.extract_strided_slice %156 {offsets = [0, 0], sizes = [32, 64], strides = [1, 1]} : vector<32x128xf32> to vector<32x64xf32>
    %160 = vector.extract_strided_slice %156 {offsets = [0, 64], sizes = [32, 64], strides = [1, 1]} : vector<32x128xf32> to vector<32x64xf32>
    %161 = vector.extract_strided_slice %158 {offsets = [0, 0], sizes = [32, 32], strides = [1, 1]} : vector<96x32xf32> to vector<32x32xf32>
    %162 = vector.extract_strided_slice %158 {offsets = [32, 0], sizes = [64, 32], strides = [1, 1]} : vector<96x32xf32> to vector<64x32xf32>
    %163 = arith.addf %152, %134 : vector<8x32xf32>
    %164 = arith.mulf %163, %163 : vector<8x32xf32>
    %cst_51 = arith.constant dense<0.000000e+00> : vector<8xf32>
    %165 = vector.multi_reduction <add>, %164, %cst_51 [1] : vector<8x32xf32> to vector<8xf32>
    %166 = vector.shape_cast %165 : vector<8xf32> to vector<8x1xf32>
    %cst_52 = arith.constant 3.200000e+01 : f32
    %167 = vector.broadcast %cst_52 : f32 to vector<8x1xf32>
    %168 = arith.divf %166, %167 : vector<8x1xf32>
    %cst_53 = arith.constant 9.99999997E-7 : f32
    %169 = vector.broadcast %cst_53 : f32 to vector<8x1xf32>
    %170 = arith.addf %168, %169 : vector<8x1xf32>
    %171 = math.rsqrt %170 : vector<8x1xf32>
    %172 = vector.broadcast %171 : vector<8x1xf32> to vector<8x32xf32>
    %173 = arith.mulf %163, %172 : vector<8x32xf32>
    %174 = vector.extract_strided_slice %154 {offsets = [0, 0], sizes = [1, 32], strides = [1, 1]} : vector<2x32xf32> to vector<1x32xf32>
    %175 = vector.broadcast %174 : vector<1x32xf32> to vector<8x32xf32>
    %176 = arith.mulf %173, %175 : vector<8x32xf32>
    %cst_54 = arith.constant dense<0.000000e+00> : vector<8x64xf32>
    %177 = tpu.matmul %176, %159, %cst_54 {dimension_numbers = #tpu.dot_dimension_numbers<[1], [0], [0], [1], [0, 0, 1, 1], [], []>} : vector<8x32xf32>, vector<32x64xf32>, vector<8x64xf32> -> vector<8x64xf32>
    %178 = vector.extract_strided_slice %177 {offsets = [0, 0], sizes = [8, 8], strides = [1, 1]} : vector<8x64xf32> to vector<8x8xf32>
    %179 = vector.extract_strided_slice %177 {offsets = [0, 8], sizes = [8, 8], strides = [1, 1]} : vector<8x64xf32> to vector<8x8xf32>
    %180 = tpu.concatenate %178, %179 in 0 : vector<8x8xf32>, vector<8x8xf32> -> vector<16x8xf32>
    %181 = vector.extract_strided_slice %177 {offsets = [0, 32], sizes = [8, 8], strides = [1, 1]} : vector<8x64xf32> to vector<8x8xf32>
    %182 = vector.extract_strided_slice %177 {offsets = [0, 48], sizes = [8, 8], strides = [1, 1]} : vector<8x64xf32> to vector<8x8xf32>
    %183 = vector.extract_strided_slice %180 {offsets = [0, 0], sizes = [16, 4], strides = [1, 1]} : vector<16x8xf32> to vector<16x4xf32>
    %184 = vector.extract_strided_slice %180 {offsets = [0, 4], sizes = [16, 4], strides = [1, 1]} : vector<16x8xf32> to vector<16x4xf32>
    %185 = arith.mulf %183, %0 : vector<16x4xf32>
    %186 = arith.mulf %184, %1 : vector<16x4xf32>
    %187 = arith.subf %185, %186 : vector<16x4xf32>
    %188 = arith.mulf %184, %0 : vector<16x4xf32>
    %189 = arith.mulf %183, %1 : vector<16x4xf32>
    %190 = arith.addf %188, %189 : vector<16x4xf32>
    %191 = tpu.concatenate %187, %190 in 1 : vector<16x4xf32>, vector<16x4xf32> -> vector<16x8xf32>
    %192 = vector.extract_strided_slice %181 {offsets = [0, 0], sizes = [8, 4], strides = [1, 1]} : vector<8x8xf32> to vector<8x4xf32>
    %193 = vector.extract_strided_slice %181 {offsets = [0, 4], sizes = [8, 4], strides = [1, 1]} : vector<8x8xf32> to vector<8x4xf32>
    %194 = arith.mulf %192, %2 : vector<8x4xf32>
    %195 = arith.mulf %193, %3 : vector<8x4xf32>
    %196 = arith.subf %194, %195 : vector<8x4xf32>
    %197 = arith.mulf %193, %2 : vector<8x4xf32>
    %198 = arith.mulf %192, %3 : vector<8x4xf32>
    %199 = arith.addf %197, %198 : vector<8x4xf32>
    %200 = tpu.concatenate %196, %199 in 1 : vector<8x4xf32>, vector<8x4xf32> -> vector<8x8xf32>
    %cst_55 = arith.constant dense<0.000000e+00> : vector<16x8xf32>
    %201 = tpu.matmul %191, %200, %cst_55 {dimension_numbers = #tpu.dot_dimension_numbers<[1], [1], [0], [0], [0, 0, 1, 0], [], []>} : vector<16x8xf32>, vector<8x8xf32>, vector<16x8xf32> -> vector<16x8xf32>
    %cst_56 = arith.constant 0.353553385 : f32
    %202 = vector.broadcast %cst_56 : f32 to vector<16x8xf32>
    %203 = arith.mulf %201, %202 : vector<16x8xf32>
    %cst_57 = arith.constant -1.000000e+30 : f32
    %204 = vector.broadcast %cst_57 : f32 to vector<16x8xf32>
    %205 = arith.select %22, %203, %204 : vector<16x8xi1>, vector<16x8xf32>
    %cst_58 = arith.constant dense<0xFF800000> : vector<16xf32>
    %206 = vector.multi_reduction <maximumf>, %205, %cst_58 [1] : vector<16x8xf32> to vector<16xf32>
    %207 = vector.shape_cast %206 : vector<16xf32> to vector<16x1xf32>
    %208 = vector.broadcast %207 : vector<16x1xf32> to vector<16x8xf32>
    %209 = arith.subf %205, %208 : vector<16x8xf32>
    %210 = math.exp %209 : vector<16x8xf32>
    %cst_59 = arith.constant dense<0.000000e+00> : vector<16xf32>
    %211 = vector.multi_reduction <add>, %210, %cst_59 [1] : vector<16x8xf32> to vector<16xf32>
    %212 = vector.shape_cast %211 : vector<16xf32> to vector<16x1xf32>
    %213 = tpu.reciprocal %212 {approx = true} : vector<16x1xf32> -> vector<16x1xf32>
    %214 = vector.broadcast %213 : vector<16x1xf32> to vector<16x8xf32>
    %215 = arith.mulf %210, %214 : vector<16x8xf32>
    %cst_60 = arith.constant dense<0.000000e+00> : vector<16x8xf32>
    %216 = tpu.matmul %215, %182, %cst_60 {dimension_numbers = #tpu.dot_dimension_numbers<[1], [0], [0], [1], [0, 0, 1, 1], [], []>} : vector<16x8xf32>, vector<8x8xf32>, vector<16x8xf32> -> vector<16x8xf32>
    %217 = vector.extract_strided_slice %216 {offsets = [0, 0], sizes = [8, 8], strides = [1, 1]} : vector<16x8xf32> to vector<8x8xf32>
    %218 = vector.extract_strided_slice %216 {offsets = [8, 0], sizes = [8, 8], strides = [1, 1]} : vector<16x8xf32> to vector<8x8xf32>
    %219 = vector.extract_strided_slice %177 {offsets = [0, 16], sizes = [8, 8], strides = [1, 1]} : vector<8x64xf32> to vector<8x8xf32>
    %220 = vector.extract_strided_slice %177 {offsets = [0, 24], sizes = [8, 8], strides = [1, 1]} : vector<8x64xf32> to vector<8x8xf32>
    %221 = tpu.concatenate %219, %220 in 0 : vector<8x8xf32>, vector<8x8xf32> -> vector<16x8xf32>
    %222 = vector.extract_strided_slice %177 {offsets = [0, 40], sizes = [8, 8], strides = [1, 1]} : vector<8x64xf32> to vector<8x8xf32>
    %223 = vector.extract_strided_slice %177 {offsets = [0, 56], sizes = [8, 8], strides = [1, 1]} : vector<8x64xf32> to vector<8x8xf32>
    %224 = vector.extract_strided_slice %221 {offsets = [0, 0], sizes = [16, 4], strides = [1, 1]} : vector<16x8xf32> to vector<16x4xf32>
    %225 = vector.extract_strided_slice %221 {offsets = [0, 4], sizes = [16, 4], strides = [1, 1]} : vector<16x8xf32> to vector<16x4xf32>
    %226 = arith.mulf %224, %0 : vector<16x4xf32>
    %227 = arith.mulf %225, %1 : vector<16x4xf32>
    %228 = arith.subf %226, %227 : vector<16x4xf32>
    %229 = arith.mulf %225, %0 : vector<16x4xf32>
    %230 = arith.mulf %224, %1 : vector<16x4xf32>
    %231 = arith.addf %229, %230 : vector<16x4xf32>
    %232 = tpu.concatenate %228, %231 in 1 : vector<16x4xf32>, vector<16x4xf32> -> vector<16x8xf32>
    %233 = vector.extract_strided_slice %222 {offsets = [0, 0], sizes = [8, 4], strides = [1, 1]} : vector<8x8xf32> to vector<8x4xf32>
    %234 = vector.extract_strided_slice %222 {offsets = [0, 4], sizes = [8, 4], strides = [1, 1]} : vector<8x8xf32> to vector<8x4xf32>
    %235 = arith.mulf %233, %2 : vector<8x4xf32>
    %236 = arith.mulf %234, %3 : vector<8x4xf32>
    %237 = arith.subf %235, %236 : vector<8x4xf32>
    %238 = arith.mulf %234, %2 : vector<8x4xf32>
    %239 = arith.mulf %233, %3 : vector<8x4xf32>
    %240 = arith.addf %238, %239 : vector<8x4xf32>
    %241 = tpu.concatenate %237, %240 in 1 : vector<8x4xf32>, vector<8x4xf32> -> vector<8x8xf32>
    %cst_61 = arith.constant dense<0.000000e+00> : vector<16x8xf32>
    %242 = tpu.matmul %232, %241, %cst_61 {dimension_numbers = #tpu.dot_dimension_numbers<[1], [1], [0], [0], [0, 0, 1, 0], [], []>} : vector<16x8xf32>, vector<8x8xf32>, vector<16x8xf32> -> vector<16x8xf32>
    %cst_62 = arith.constant 0.353553385 : f32
    %243 = vector.broadcast %cst_62 : f32 to vector<16x8xf32>
    %244 = arith.mulf %242, %243 : vector<16x8xf32>
    %cst_63 = arith.constant -1.000000e+30 : f32
    %245 = vector.broadcast %cst_63 : f32 to vector<16x8xf32>
    %246 = arith.select %22, %244, %245 : vector<16x8xi1>, vector<16x8xf32>
    %cst_64 = arith.constant dense<0xFF800000> : vector<16xf32>
    %247 = vector.multi_reduction <maximumf>, %246, %cst_64 [1] : vector<16x8xf32> to vector<16xf32>
    %248 = vector.shape_cast %247 : vector<16xf32> to vector<16x1xf32>
    %249 = vector.broadcast %248 : vector<16x1xf32> to vector<16x8xf32>
    %250 = arith.subf %246, %249 : vector<16x8xf32>
    %251 = math.exp %250 : vector<16x8xf32>
    %cst_65 = arith.constant dense<0.000000e+00> : vector<16xf32>
    %252 = vector.multi_reduction <add>, %251, %cst_65 [1] : vector<16x8xf32> to vector<16xf32>
    %253 = vector.shape_cast %252 : vector<16xf32> to vector<16x1xf32>
    %254 = tpu.reciprocal %253 {approx = true} : vector<16x1xf32> -> vector<16x1xf32>
    %255 = vector.broadcast %254 : vector<16x1xf32> to vector<16x8xf32>
    %256 = arith.mulf %251, %255 : vector<16x8xf32>
    %cst_66 = arith.constant dense<0.000000e+00> : vector<16x8xf32>
    %257 = tpu.matmul %256, %223, %cst_66 {dimension_numbers = #tpu.dot_dimension_numbers<[1], [0], [0], [1], [0, 0, 1, 1], [], []>} : vector<16x8xf32>, vector<8x8xf32>, vector<16x8xf32> -> vector<16x8xf32>
    %258 = vector.extract_strided_slice %257 {offsets = [0, 0], sizes = [8, 8], strides = [1, 1]} : vector<16x8xf32> to vector<8x8xf32>
    %259 = vector.extract_strided_slice %257 {offsets = [8, 0], sizes = [8, 8], strides = [1, 1]} : vector<16x8xf32> to vector<8x8xf32>
    %260 = tpu.concatenate %217, %218, %258, %259 in 1 : vector<8x8xf32>, vector<8x8xf32>, vector<8x8xf32>, vector<8x8xf32> -> vector<8x32xf32>
    %cst_67 = arith.constant dense<0.000000e+00> : vector<8x32xf32>
    %261 = tpu.matmul %260, %161, %cst_67 {dimension_numbers = #tpu.dot_dimension_numbers<[1], [0], [0], [1], [0, 0, 1, 1], [], []>} : vector<8x32xf32>, vector<32x32xf32>, vector<8x32xf32> -> vector<8x32xf32>
    %262 = arith.addf %261, %163 : vector<8x32xf32>
    %263 = arith.mulf %262, %262 : vector<8x32xf32>
    %cst_68 = arith.constant dense<0.000000e+00> : vector<8xf32>
    %264 = vector.multi_reduction <add>, %263, %cst_68 [1] : vector<8x32xf32> to vector<8xf32>
    %265 = vector.shape_cast %264 : vector<8xf32> to vector<8x1xf32>
    %cst_69 = arith.constant 3.200000e+01 : f32
    %266 = vector.broadcast %cst_69 : f32 to vector<8x1xf32>
    %267 = arith.divf %265, %266 : vector<8x1xf32>
    %cst_70 = arith.constant 9.99999997E-7 : f32
    %268 = vector.broadcast %cst_70 : f32 to vector<8x1xf32>
    %269 = arith.addf %267, %268 : vector<8x1xf32>
    %270 = math.rsqrt %269 : vector<8x1xf32>
    %271 = vector.broadcast %270 : vector<8x1xf32> to vector<8x32xf32>
    %272 = arith.mulf %262, %271 : vector<8x32xf32>
    %273 = vector.extract_strided_slice %154 {offsets = [1, 0], sizes = [1, 32], strides = [1, 1]} : vector<2x32xf32> to vector<1x32xf32>
    %274 = vector.broadcast %273 : vector<1x32xf32> to vector<8x32xf32>
    %275 = arith.mulf %272, %274 : vector<8x32xf32>
    %cst_71 = arith.constant dense<0.000000e+00> : vector<8x64xf32>
    %276 = tpu.matmul %275, %160, %cst_71 {dimension_numbers = #tpu.dot_dimension_numbers<[1], [0], [0], [1], [0, 0, 1, 1], [], []>} : vector<8x32xf32>, vector<32x64xf32>, vector<8x64xf32> -> vector<8x64xf32>
    %cst_72 = arith.constant 0.000000e+00 : f32
    %277 = vector.broadcast %cst_72 : f32 to vector<8x64xf32>
    %278 = arith.maximumf %276, %277 : vector<8x64xf32>
    %279 = arith.mulf %278, %278 : vector<8x64xf32>
    %cst_73 = arith.constant dense<0.000000e+00> : vector<8x32xf32>
    %280 = tpu.matmul %279, %162, %cst_73 {dimension_numbers = #tpu.dot_dimension_numbers<[1], [0], [0], [1], [0, 0, 1, 1], [], []>} : vector<8x64xf32>, vector<64x32xf32>, vector<8x32xf32> -> vector<8x32xf32>
    %281 = vector.extract_strided_slice %280 {offsets = [7, 0], sizes = [1, 32], strides = [1, 1]} : vector<8x32xf32> to vector<1x32xf32>
    %282 = vector.extract_strided_slice %262 {offsets = [7, 0], sizes = [1, 32], strides = [1, 1]} : vector<8x32xf32> to vector<1x32xf32>
    %283 = arith.addf %281, %282 : vector<1x32xf32>
    %284 = arith.mulf %283, %283 : vector<1x32xf32>
    %cst_74 = arith.constant dense<0.000000e+00> : vector<1xf32>
    %285 = vector.multi_reduction <add>, %284, %cst_74 [1] : vector<1x32xf32> to vector<1xf32>
    %286 = vector.shape_cast %285 : vector<1xf32> to vector<1x1xf32>
    %cst_75 = arith.constant 3.200000e+01 : f32
    %287 = vector.broadcast %cst_75 : f32 to vector<1x1xf32>
    %288 = arith.divf %286, %287 : vector<1x1xf32>
    %cst_76 = arith.constant 9.99999997E-7 : f32
    %289 = vector.broadcast %cst_76 : f32 to vector<1x1xf32>
    %290 = arith.addf %288, %289 : vector<1x1xf32>
    %291 = math.rsqrt %290 : vector<1x1xf32>
    %292 = vector.broadcast %291 : vector<1x1xf32> to vector<1x32xf32>
    %293 = arith.mulf %283, %292 : vector<1x32xf32>
    %c0_77 = arith.constant 0 : index
    %c0_78 = arith.constant 0 : index
    %294 = vector.load %arg5[%c0_77, %c0_78] : memref<32x128xf32, #tpu.memory_space<vmem>>, vector<32x128xf32>
    %cst_79 = arith.constant dense<0.000000e+00> : vector<1x128xf32>
    %295 = tpu.matmul %293, %294, %cst_79 {dimension_numbers = #tpu.dot_dimension_numbers<[1], [0], [0], [1], [0, 0, 1, 1], [], []>} : vector<1x32xf32>, vector<32x128xf32>, vector<1x128xf32> -> vector<1x128xf32>
    %c0_80 = arith.constant 0 : index
    %c0_81 = arith.constant 0 : index
    %296 = vector.load %arg6[%c0_80, %c0_81] : memref<1x128xf32, #tpu.memory_space<vmem>>, vector<1x128xf32>
    tpu.vector_store %arg6[%c0_80, %c0_81], %295 {strides = array<i32>} : memref<1x128xf32, #tpu.memory_space<vmem>>, vector<1x128xf32>,
    return
  }
}

</mosaic_0001>

<bundles_post_ra>
// kernel: arcee_forward.1
= control target key start
LH: loop header
LB: loop body
LE: loop exit
PB: predicated region body
PF: predicated region fallthrough
CT: control target
= control target key end

     0   :  { %vm77_vm0 = vcmask 261120   ;;  %s1838_s0 = inlined_call_operand.vmem [shape: f32[8,32], index: 0, kind: input, shape index: {}]   ;;  %s1839_s1 = inlined_call_operand.vmem [shape: f32[16,8], index: 1, kind: input, shape index: {}]   ;;  %s1840_s2 = inlined_call_operand.vmem [shape: f32[2,2,32], index: 2, kind: input, shape index: {}]   ;;  %s1841_s3 = inlined_call_operand.vmem [shape: f32[2,32,128], index: 3, kind: input, shape index: {}]   ;;  %s1842_s4 = inlined_call_operand.vmem [shape: f32[2,96,32], index: 4, kind: input, shape index: {}]   ;;  %s1843_s5 = inlined_call_operand.vmem [shape: f32[32,128], index: 5, kind: input, shape index: {}]   ;;  %s1844_s6 = inlined_call_operand.hbm [shape: f32[1,128], index: 6, kind: output, shape index: {}]  }
   0x1   :  { %v1360_v0 = vld [vmem:[%s1838_s0] sm:$0xff] }
   0x2   :  { %11 = vsyncpa [#allocation3], 0  ;;  %v76_v1 = vmul.f32 %v1360_v0, %v1360_v0  ;;  %v1301_v3 = vmov 32.0   ;;  %v1368_v7 = vld [vmem:[%s1841_s3 + $0x18] sm:$0xff]  ;;  %v1374_v8 = vld [vmem:[%s1841_s3 + $0x10] sm:$0xff]  ;;  %s1302_s28 = smov 28  }
   0x3   :  { %1231 = vrcp.f32 %v1301_v3  ;;  %118 = vmatpush.msra.mxu0 %v1368_v7  ;;  %v1379_v9 = vld [vmem:[%s1839_s1] sm:$0xff]  ;;  %v1211_v10 = vpack.i.bf16 %v1374_v8, %v1368_v7  ;;  %s1303_s29 = smov 32   ;;  %v1388_v11 = vld [vmem:[%s1841_s3 + $0x8] sm:$0xff]  ;;  %s1304_s10 = smov 40   ;;  %vm204_vm5 = vcmask 64512   ;;  %vm170_vm6 = vcmask 31744  }
   0x4   :  { %v78_v2 = vsel %vm77_vm0, %v76_v1, 0.0  ;;  %186 = vrot.lane.b32.xlu1 %v1379_v9, %s1302_s28  ;;  %v1393_v12 = vld [vmem:[%s1841_s3] sm:$0xff]  ;;  %357 = vrot.lane.b32.xlu2 %v1379_v9, %s1304_s10  ;;  %s1305_s11 = smov 36   ;;  %s1306_s12 = smov 124   ;;  %v1416_v20 = vld [vmem:[%s1839_s1 + $0x8] sm:$0xff]  ;;  %vm487_vm9 = vcmask 130048  }
   0x5   :  { %79 = vadd.xlane.f32.xlu0 %v78_v2  ;;  %119 = vmatpush.msra.mxu0 %v1374_v8  ;;  %v1216_v14 = vpack.i.bf16 %v1393_v12, %v1388_v11  ;;  %s1307_s13 = smov 16   ;;  %s1308_s14 = smov 12   ;;  %v1423_v26 = vld [vmem:[%s1840_s2] sm:$0x3]  ;;  %vm489_vm10 = vcmask 195584   ;;  %vm594_vm14 = vcmask 523264  }
   0x6   :  { %s1309_s15 = smov 20   ;;  %v101_v28 = vperm.slane %v1423_v26, 0  ;;  %s1310_s1 = smov 120  }
   0x7   :  { %120 = vmatpush.msra.mxu0 %v1388_v11  ;;  %s1311_s20 = smov 4   ;;  %s1312_s21 = smov 44   ;;  %v72_v11 = vld [vmem:[%s1842_s4 + $0x48] sm:$0xff] }
   0x8   :  { %s1313_s22 = smov 88   ;;  %s1314_s23 = smov 96  }
   0x9   :  { %v1232_v4 = vpop.eup %1231  ;;  %121 = vmatpush.msra.mxu0 %v1393_v12  ;;  %s1315_s24 = smov 112   ;;  %s1316_s0 = smov 80   ;;  %v71_v12 = vld [vmem:[%s1842_s4 + $0x40] sm:$0xff] }
   0xa   :  { %v82_v5 = vmul.f32 32.0, %v1232_v4  ;;  %vm86_vm1 = vweird.f32 %v1232_v4  ;;  %s1317_s25 = smov 72   ;;  %s1318_s26 = smov 8  }
   0xb   :  { %s1319_s27 = smov 24  }
   0xc   :  { %v83_v6 = vsub.f32 1.0, %v82_v5  ;;  %182 = vrot.lane.b32.xlu1 %v1379_v9, %s1305_s11  ;;  %295 = vrot.lane.b32.xlu2 %v1379_v9, %s1307_s13 }
   0xe   :  { %v84_v13 = vmul.f32 %v1232_v4, %v83_v6 }
  0x10   :  { %v85_v15 = vadd.f32 %v1232_v4, %v84_v13 }
  0x12   :  { %v1404_v16 = vsel %vm86_vm1, %v1232_v4, %v85_v15 }
  0x14   :  { %321 = vrot.lane.b32.xlu1 %v1379_v9, %s1308_s14 }
  0x19   :  { %173 = vrot.lane.b32.xlu0 %v1379_v9, %s1303_s29 }
  0x1c   :  { %297 = vrot.lane.b32.xlu1 %v1416_v20, %s1307_s13 }
  0x21   :  { %152 = vrot.lane.b32.xlu0 %v1379_v9, %s1306_s12 }
  0x29   :  { %313 = vrot.lane.b32.xlu0 %v1379_v9, %s1309_s15 }
  0x5e   :  { %v1441_v37 = vpop.permute.xlu2 %357 }
  0x66   :  { %v1451_v39 = vpop.permute.xlu2 %295 }
  0x76   :  { %v1428_v32 = vpop.permute.xlu1 %186 }
  0x78   :  { %v80_v17 = vpop.xlane.xlu0 %79 }
  0x79   :  { %v88_v18 = vmul.f32 %v1404_v16, %v80_v17 }
  0x7b   :  { %v89_v19 = vadd.f32 1e-06, %v88_v18 }
  0x7d   :  { %1233 = vrsqrt.f32 %v89_v19  ;;  %vm96_vm3 = vweird.f32 %v89_v19 }
  0x7e   :  { %v1456_v41 = vpop.permute.xlu1 %182 }
  0x83   :  { %v1234_v21 = vpop.eup %1233 }
  0x84   :  { %v91_v22 = vmul.f32 %v1234_v21, %v89_v19  ;;  %vm97_vm2 = vweird.f32 %v1234_v21 }
  0x85   :  { %vm98_vm4 = vmor %vm96_vm3, %vm97_vm2 }
  0x86   :  { %v92_v23 = vmul.f32 %v1234_v21, %v91_v22  ;;  %v1464_v43 = vpop.permute.xlu1 %321 }
  0x88   :  { %v93_v24 = vmul.f32 0.5, %v92_v23 }
  0x8a   :  { %v94_v25 = vsub.f32 1.5, %v93_v24 }
  0x8b   :  { %v1432_v34 = vpop.permute.xlu0 %173 }
  0x8c   :  { %v95_v27 = vmul.f32 %v1234_v21, %v94_v25 }
  0x8e   :  { %v99_v29 = vsel %vm98_vm4, %v1234_v21, %v95_v27  ;;  %v1477_v46 = vpop.permute.xlu1 %297 }
  0x8f   :  { %v100_v30 = vmul.f32 %v99_v29, %v1360_v0 }
  0x91   :  { %v102_v31 = vmul.f32 %v101_v28, %v100_v30 }
  0x93   :  { %1144 = vmatmul.msk.f32.vlgmr.msra.gmra.mxu0 %vm77_vm0, %v102_v31  ;;  %v1484_v49 = vpop.permute.xlu0 %152 }
  0x9b   :  { %v1496_v54 = vpop.permute.xlu0 %313 }
 0x110   :  { %v1430_v33 = vpop.f32.mrf.mxu0 }
 0x111   :  { %127 = vrot.lane.b32.xlu2 %v1430_v33, %s1310_s1  ;;  %v189_v35 = vmul.f32 %v1428_v32, %v1430_v33  ;;  %v176_v36 = vmul.f32 %v1432_v34, %v1430_v33  ;;  %v360_v38 = vmul.f32 %v1441_v37, %v1430_v33  ;;  %v301_v40 = vmul.f32 %v1451_v39, %v1430_v33 }
 0x112   :  { %v185_v42 = vmul.f32 %v1456_v41, %v1430_v33  ;;  %v327_v44 = vmul.f32 %v1464_v43, %v1430_v33  ;;  %v1473_v45 = vmul.f32 %v1430_v33, %v1379_v9  ;;  %v158_v52 = vmul.f32 %v1484_v49, %v1430_v33 }
 0x113   :  { %191 = vrot.lane.b32.xlu1 %v189_v35, %s1311_s20  ;;  %178 = vrot.lane.b32.xlu0 %v176_v36, %s1306_s12  ;;  %v319_v3 = vmul.f32 %v1496_v54, %v1430_v33 }
 0x119   :  { %323 = vrot.lane.b32.xlu2 %v1416_v20, %s1308_s14  ;;  %s1320_s14 = smov 64  }
 0x11b   :  { %362 = vrot.lane.b32.xlu1 %v360_v38, %s1306_s12  ;;  %154 = vrot.lane.b32.xlu0 %v1416_v20, %s1306_s12 }
 0x121   :  { %366 = vrot.lane.b32.xlu2 %v1379_v9, %s1312_s21 }
 0x123   :  { %305 = vrot.lane.b32.xlu1 %v301_v40, %s1306_s12 }
 0x129   :  { %371 = vrot.lane.b32.xlu2 %v185_v42, %s1311_s20 }
 0x12b   :  { %315 = vrot.lane.b32.xlu1 %v1416_v20, %s1309_s15 }
 0x131   :  { %331 = vrot.lane.b32.xlu2 %v327_v44, %s1311_s20 }
 0x133   :  { %144 = vrot.lane.b32.xlu1 %v1379_v9, %s1311_s20 }
 0x13b   :  { %134 = vrot.lane.b32.xlu1 %v1473_v45, %s1306_s12 }
 0x16b   :  { %v1479_v47 = vpop.permute.xlu2 %127 }
 0x16c   :  { %v302_v48 = vmul.f32 %v1477_v46, %v1479_v47  ;;  %v131_v1 = vmul.f32 %v1479_v47, %v1416_v20 }
 0x16e   :  { %307 = vrot.lane.b32.xlu2 %v302_v48, %s1306_s12 }
 0x173   :  { %v1486_v50 = vpop.permute.xlu2 %323 }
 0x174   :  { %v328_v51 = vmul.f32 %v1486_v50, %v1479_v47 }
 0x176   :  { %333 = vrot.lane.b32.xlu0 %v328_v51, %s1311_s20  ;;  %162 = vrot.lane.b32.xlu2 %v158_v52, %s1311_s20 }
 0x17b   :  { %v1494_v53 = vpop.permute.xlu2 %366 }
 0x17c   :  { %v369_v55 = vmul.f32 %v1494_v53, %v1430_v33 }
 0x183   :  { %v372_v56 = vpop.permute.xlu2 %371 }
 0x184   :  { %v374_v57 = vadd.f32 %v372_v56, %v369_v55 }
 0x185   :  { %v192_v58 = vpop.permute.xlu1 %191  ;;  %v179_v60 = vpop.permute.xlu0 %178 }
 0x186   :  { %v194_v59 = vadd.f32 %v192_v58, %v185_v42  ;;  %380 = vrot.lane.b32.xlu1 %v374_v57, %s1313_s22  ;;  %v181_v61 = vsub.f32 %v176_v36, %v179_v60 }
 0x188   :  { %200 = vrot.lane.b32.xlu0 %v194_v59, %s1314_s23  ;;  %196 = vrot.lane.b32.xlu2 %v181_v61, %s1314_s23 }
 0x18b   :  { %v332_v2 = vpop.permute.xlu2 %331 }
 0x18c   :  { %v337_v5 = vadd.f32 %v332_v2, %v319_v3  ;;  %v26_v2 = vlaneseq }
 0x18d   :  { %v363_v62 = vpop.permute.xlu1 %362  ;;  %v1513_v13 = vpop.permute.xlu0 %154 }
 0x18e   :  { %v365_v63 = vsub.f32 %v360_v38, %v363_v62  ;;  %146 = vrot.lane.b32.xlu1 %v1416_v20, %s1311_s20  ;;  %v159_v15 = vmul.f32 %v1513_v13, %v1479_v47  ;;  %v27_v3 = vshrl.u32 %v26_v2, 7 }
 0x190   :  { %376 = vrot.lane.b32.xlu0 %v365_v63, %s1313_s22  ;;  %136 = vrot.lane.b32.xlu2 %v131_v1, %s1306_s12 }
 0x195   :  { %v306_v4 = vpop.permute.xlu1 %305 }
 0x196   :  { %v311_v6 = vsub.f32 %v301_v40, %v306_v4  ;;  %v33_v4 = vand.u32 7, %v27_v3 }
 0x198   :  { %349 = vrot.lane.b32.xlu0 %v337_v5, %s1315_s24  ;;  %341 = vrot.lane.b32.xlu2 %v311_v6, %s1315_s24  ;;  %v54_v5 = vand.u32 127, %v26_v2 }
 0x19a   :  { %vm1545_vm7 = vcmp.le.s32.totalorder %v54_v5, %v33_v4 }
 0x19d   :  { %v1519_v19 = vpop.permute.xlu1 %315 }
 0x19e   :  { %v320_v21 = vmul.f32 %v1519_v19, %v1479_v47 }
 0x1a0   :  { %164 = vrot.lane.b32.xlu0 %v159_v15, %s1311_s20 }
 0x1a5   :  { %v1524_v25 = vpop.permute.xlu1 %144 }
 0x1a6   :  { %v150_v28 = vmul.f32 %v1524_v25, %v1430_v33 }
 0x1ad   :  { %v135_v29 = vpop.permute.xlu1 %134 }
 0x1ae   :  { %v140_v36 = vsub.f32 %v1473_v45, %v135_v29 }
 0x1c8   :  { %v308_v17 = vpop.permute.xlu2 %307 }
 0x1c9   :  { %v312_v18 = vsub.f32 %v302_v48, %v308_v17 }
 0x1cb   :  { %343 = vrot.lane.b32.xlu1 %v312_v18, %s1315_s24  ;;  %v28_v18 = vadd.s32 8, %v27_v3 }
 0x1d0   :  { %v163_v24 = vpop.permute.xlu2 %162 }
 0x1d1   :  { %v168_v30 = vadd.f32 %v163_v24, %v150_v28 }
 0x1d3   :  { %v171_v38 = vsel %vm170_vm6, %v140_v36, %v168_v30 }
 0x1e2   :  { %v197_v27 = vpop.permute.xlu2 %196 }
 0x1e8   :  { %v334_v22 = vpop.permute.xlu0 %333 }
 0x1e9   :  { %v338_v23 = vadd.f32 %v334_v22, %v320_v21  ;;  %v40_v22 = vand.u32 7, %v28_v18 }
 0x1ea   :  { %v137_v40 = vpop.permute.xlu2 %136 }
 0x1eb   :  { %351 = vrot.lane.b32.xlu2 %v338_v23, %s1315_s24  ;;  %v141_v58 = vsub.f32 %v131_v1, %v137_v40  ;;  %vm1555_vm8 = vcmp.le.s32.totalorder %v54_v5, %v40_v22 }
 0x1f2   :  { %v342_v51 = vpop.permute.xlu2 %341 }
 0x1f8   :  { %v381_v42 = vpop.permute.xlu1 %380 }
 0x1fa   :  { %v201_v31 = vpop.permute.xlu0 %200 }
 0x1fb   :  { %v203_v35 = vsel %vm170_vm6, %v197_v27, %v201_v31 }
 0x1fc   :  { %1145 = vmatpush.xpose.msk.msra.mxu1 %vm204_vm5, %v203_v35 }
 0x1ff   :  { %1146 = vmatmul.msk.f32.vlgmr.msra.gmra.mxu1 %vm204_vm5, %v171_v38 }
 0x200   :  { %v1537_v45 = vpop.permute.xlu1 %146 }
 0x201   :  { %v151_v56 = vmul.f32 %v1537_v45, %v1479_v47 }
 0x202   :  { %v377_v44 = vpop.permute.xlu0 %376 }
 0x203   :  { %v383_v48 = vsel %vm170_vm6, %v377_v44, %v381_v42 }
 0x204   :  { %1150 = vmatpush.xpose.msk.msra.mxu3 %vm204_vm5, %v383_v48 }
 0x20a   :  { %v350_v52 = vpop.permute.xlu0 %349 }
 0x20b   :  { %v355_v55 = vsel %vm170_vm6, %v342_v51, %v350_v52 }
 0x20c   :  { %1151 = vmatmul.msk.f32.vlgmr.msra.gmra.mxu3 %vm204_vm5, %v355_v55 }
 0x212   :  { %v165_v57 = vpop.permute.xlu0 %164 }
 0x213   :  { %v169_v59 = vadd.f32 %v165_v57, %v151_v56 }
 0x215   :  { %v172_v60 = vsel %vm170_vm6, %v141_v58, %v169_v59 }
 0x216   :  { %1147 = vmatmul.msk.f32.gmra.mxu1 %vm204_vm5, %v172_v60 }
 0x23d   :  { %v344_v61 = vpop.permute.xlu1 %343 }
 0x245   :  { %v352_v62 = vpop.permute.xlu2 %351 }
 0x246   :  { %v356_v63 = vsel %vm170_vm6, %v344_v61, %v352_v62 }
 0x247   :  { %1152 = vmatmul.msk.f32.gmra.mxu3 %vm204_vm5, %v356_v63 }
 0x27c   :  { %v231_v6 = vpop.f32.mrf.mxu1 }
 0x27d   :  { %v237_v1 = vmul.f32 0.35355338, %v231_v6 }
 0x27f   :  { %v239_v15 = vsel %vm1545_vm7, %v237_v1, -1e+30 }
 0x280   :  { %v241_v17 = vsel %vm204_vm5, %v239_v15, -inf }
 0x281   :  { %242 = vmax.xlane.f32.xlu0 %v241_v17 }
 0x28f   :  { %v410_v21 = vpop.f32.mrf.mxu3 }
 0x290   :  { %v416_v23 = vmul.f32 0.35355338, %v410_v21 }
 0x292   :  { %v418_v24 = vsel %vm1545_vm7, %v416_v23, -1e+30 }
 0x293   :  { %v234_v27 = vpop.f32.mrf.mxu1  ;;  %v420_v28 = vsel %vm204_vm5, %v418_v24, -inf }
 0x294   :  { %v238_v30 = vmul.f32 0.35355338, %v234_v27  ;;  %421 = vmax.xlane.f32.xlu2 %v420_v28 }
 0x296   :  { %v240_v31 = vsel %vm1555_vm8, %v238_v30, -1e+30 }
 0x297   :  { %v244_v35 = vsel %vm204_vm5, %v240_v31, -inf }
 0x298   :  { %245 = vmax.xlane.f32.xlu1 %v244_v35 }
 0x2ca   :  { %v413_v36 = vpop.f32.mrf.mxu3 }
 0x2cb   :  { %v417_v38 = vmul.f32 0.35355338, %v413_v36 }
 0x2cd   :  { %v419_v40 = vsel %vm1555_vm8, %v417_v38, -1e+30 }
 0x2ce   :  { %v423_v42 = vsel %vm204_vm5, %v419_v40, -inf }
 0x2cf   :  { %424 = vmax.xlane.f32.xlu0 %v423_v42 }
 0x2f4   :  { %v243_v44 = vpop.xlane.xlu0 %242 }
 0x2f5   :  { %v247_v48 = vsub.f32 %v239_v15, %v243_v44 }
 0x2f7   :  { %v249_v51 = vmul.f32 1.442695, %v247_v48 }
 0x2f9   :  { %1235 = vpow2.f32 %v249_v51  ;;  %v66_v51 = vld [vmem:[%s1842_s4 + $0x18] sm:$0xff] }
 0x2ff   :  { %v1236_v52 = vpop.eup %1235 }
 0x300   :  { %v253_v55 = vsel %vm204_vm5, %v1236_v52, 0.0 }
 0x301   :  { %254 = vadd.xlane.f32.xlu2 %v253_v55  ;;  %v64_v55 = vld [vmem:[%s1842_s4 + $0x8] sm:$0xff] }
 0x307   :  { %v422_v56 = vpop.xlane.xlu2 %421 }
 0x308   :  { %v426_v57 = vsub.f32 %v418_v24, %v422_v56  ;;  %v63_v56 = vld [vmem:[%s1842_s4] sm:$0xff] }
 0x30a   :  { %v428_v58 = vmul.f32 1.442695, %v426_v57 }
 0x30b   :  { %v246_v59 = vpop.xlane.xlu1 %245 }
 0x30c   :  { %1237 = vpow2.f32 %v428_v58  ;;  %v248_v60 = vsub.f32 %v240_v31, %v246_v59 }
 0x30e   :  { %v251_v61 = vmul.f32 1.442695, %v248_v60 }
 0x310   :  { %1239 = vpow2.f32 %v251_v61 }
 0x312   :  { %v1238_v62 = vpop.eup %1237 }
 0x313   :  { %v432_v63 = vsel %vm204_vm5, %v1238_v62, 0.0 }
 0x314   :  { %433 = vadd.xlane.f32.xlu0 %v432_v63 }
 0x316   :  { %v1240_v2 = vpop.eup %1239 }
 0x317   :  { %v256_v3 = vsel %vm204_vm5, %v1240_v2, 0.0 }
 0x318   :  { %257 = vadd.xlane.f32.xlu1 %v256_v3 }
 0x319   :  { %263 = vrot.lane.b32.xlu2 %v1430_v33, %s1316_s0 }
 0x328   :  { %442 = vrot.lane.b32.xlu0 %v1430_v33, %s1317_s25 }
 0x342   :  { %v425_v4 = vpop.xlane.xlu0 %424 }
 0x343   :  { %v427_v5 = vsub.f32 %v419_v40, %v425_v4 }
 0x345   :  { %v430_v6 = vmul.f32 1.442695, %v427_v5 }
 0x347   :  { %1241 = vpow2.f32 %v430_v6 }
 0x34d   :  { %v1242_v1 = vpop.eup %1241 }
 0x34e   :  { %v435_v15 = vsel %vm204_vm5, %v1242_v1, 0.0 }
 0x34f   :  { %436 = vadd.xlane.f32.xlu1 %v435_v15 }
 0x374   :  { %v255_v17 = vpop.xlane.xlu2 %254 }
 0x375   :  { %1243 = vrcp.f32 %v255_v17 }
 0x37b   :  { %v1244_v18 = vpop.eup %1243 }
 0x37c   :  { %v264_v21 = vpop.permute.xlu2 %263  ;;  %v261_v22 = vmul.f32 %v1244_v18, %v1236_v52  ;;  %v65_v52 = vld [vmem:[%s1842_s4 + $0x10] sm:$0xff]  ;;  %v70_v18 = vld [vmem:[%s1842_s4 + $0x38] sm:$0xff] }
 0x37d   :  { %287 = vmatpush.msra.mxu2 %v264_v21 }
 0x37e   :  { %1148 = vmatmul.msk.f32.vlgmr.msra.gmra.mxu2 %vm204_vm5, %v261_v22  ;;  %v69_v22 = vld [vmem:[%s1842_s4 + $0x30] sm:$0xff] }
 0x37f   :  { %506 = vmatpush.msrb.mxu2 %v66_v51 }
 0x381   :  { %507 = vmatpush.msrb.mxu2 %v65_v52 }
 0x383   :  { %508 = vmatpush.msrb.mxu2 %v64_v55 }
 0x385   :  { %509 = vmatpush.msrb.mxu2 %v63_v56 }
 0x387   :  { %v434_v24 = vpop.xlane.xlu0 %433 }
 0x38b   :  { %v258_v23 = vpop.xlane.xlu1 %257 }
 0x38c   :  { %1245 = vrcp.f32 %v258_v23 }
 0x38d   :  { %1247 = vrcp.f32 %v434_v24 }
 0x392   :  { %v1246_v33 = vpop.eup %1245 }
 0x393   :  { %v262_v27 = vmul.f32 %v1246_v33, %v1240_v2  ;;  %v1248_v28 = vpop.eup %1247 }
 0x394   :  { %v440_v31 = vmul.f32 %v1248_v28, %v1238_v62 }
 0x395   :  { %1149 = vmatmul.msk.f32.gmra.mxu2 %vm204_vm5, %v262_v27 }
 0x39a   :  { %v443_v30 = vpop.permute.xlu0 %442 }
 0x39b   :  { %466 = vmatpush.msrb.mxu0 %v443_v30 }
 0x39c   :  { %1153 = vmatmul.msk.f32.vlgmr.msrb.gmra.mxu0 %vm204_vm5, %v440_v31  ;;  %v531_v31 = vperm.slane %v1423_v26, 1 }
 0x3c2   :  { %v437_v35 = vpop.xlane.xlu1 %436 }
 0x3c3   :  { %1249 = vrcp.f32 %v437_v35 }
 0x3c9   :  { %v1250_v36 = vpop.eup %1249 }
 0x3ca   :  { %v441_v38 = vmul.f32 %v1250_v36, %v1242_v1 }
 0x3cc   :  { %1154 = vmatmul.msk.f32.gmra.mxu0 %vm204_vm5, %v441_v38 }
 0x401   :  { %v289_v40 = vpop.f32.mrf.mxu2 }
 0x418   :  { %v292_v42 = vpop.f32.mrf.mxu2 }
 0x419   :  { %v468_v44 = vpop.f32.mrf.mxu0  ;;  %475 = vrot.lane.b32.xlu1 %v292_v42, %s1318_s26  ;;  %v67_v42 = vld [vmem:[%s1842_s4 + $0x20] sm:$0xff] }
 0x41a   :  { %479 = vrot.lane.b32.xlu2 %v468_v44, %s1307_s13 }
 0x421   :  { %1217 = vrot.lane.b32.xlu1 %v1216_v14, %s1320_s14 }
 0x449   :  { %v471_v48 = vpop.f32.mrf.mxu0 }
 0x44a   :  { %483 = vrot.lane.b32.xlu0 %v471_v48, %s1319_s27 }
 0x452   :  { %1212 = vrot.lane.b32.xlu0 %v1211_v10, %s1320_s14  ;;  %v74_v10 = vld [vmem:[%s1842_s4 + $0x58] sm:$0xff] }
 0x453   :  { %606 = vmatpush.msrb.mxu3 %v74_v10 }
 0x474   :  { %v480_v59 = vpop.permute.xlu2 %479 }
 0x48b   :  { %v476_v57 = vpop.permute.xlu1 %475 }
 0x48c   :  { %v486_v58 = vsel %vm204_vm5, %v289_v40, %v476_v57  ;;  %v68_v40 = vld [vmem:[%s1842_s4 + $0x28] sm:$0xff]  ;;  %v1642_v57 = vld [vmem:[%s1841_s3 + $0x38] sm:$0xff] }
 0x48d   :  { %v488_v61 = vsel %vm487_vm9, %v486_v58, %v480_v59  ;;  %652 = vmatpush.msra.mxu2 %v1642_v57  ;;  %v1648_v58 = vld [vmem:[%s1841_s3 + $0x30] sm:$0xff] }
 0x48e   :  { %v1221_v59 = vpack.i.bf16 %v1648_v58, %v1642_v57  ;;  %v1163_v57 = vld [vmem:[%s1842_s4 + $0x68] sm:$0xff] }
 0x48f   :  { %653 = vmatpush.msra.mxu2 %v1648_v58  ;;  %v1162_v58 = vld [vmem:[%s1842_s4 + $0x60] sm:$0xff] }
 0x493   :  { %v1218_v15 = vpop.permute.xlu1 %1217 }
 0x494   :  { %v1219_v7 = vunpack.i.l.bf16 %v1218_v15  ;;  %v1220_v8 = vunpack.i.h.bf16 %v1218_v15  ;;  %v1671_v15 = vld [vmem:[%s1840_s2 + $0x2] sm:$0x3] }
 0x495   :  { %v635_v10 = vperm.slane %v1671_v15, 0 }
 0x4bc   :  { %v484_v60 = vpop.permute.xlu0 %483 }
 0x4bd   :  { %v490_v62 = vsel %vm489_vm10, %v488_v61, %v484_v60  ;;  %v1656_v60 = vld [vmem:[%s1841_s3 + $0x28] sm:$0xff]  ;;  %v1661_v61 = vld [vmem:[%s1841_s3 + $0x20] sm:$0xff] }
 0x4be   :  { %1155 = vmatmul.msk.f32.vlgmr.msrb.gmra.mxu2 %vm77_vm0, %v490_v62  ;;  %v1226_v62 = vpack.i.bf16 %v1661_v61, %v1656_v60 }
 0x4bf   :  { %654 = vmatpush.msra.mxu2 %v1656_v60 }
 0x4c1   :  { %655 = vmatpush.msra.mxu2 %v1661_v61 }
 0x4c4   :  { %v1213_v5 = vpop.permute.xlu0 %1212 }
 0x4c5   :  { %v1214_v6 = vunpack.i.l.bf16 %v1213_v5  ;;  %v1215_v1 = vunpack.i.h.bf16 %v1213_v5 }
 0x4c7   :  { %564 = vmatpush.msrb.mxu1 %v1214_v6 }
 0x4c9   :  { %565 = vmatpush.msrb.mxu1 %v1215_v1 }
 0x4cb   :  { %566 = vmatpush.msrb.mxu1 %v1219_v7 }
 0x4cd   :  { %567 = vmatpush.msrb.mxu1 %v1220_v8 }
 0x541   :  { %v511_v63 = vpop.f32.mrf.mxu2 }
 0x542   :  { %v512_v2 = vadd.f32 %v511_v63, %v1360_v0  ;;  %v73_v0 = vld [vmem:[%s1842_s4 + $0x50] sm:$0xff] }
 0x543   :  { %607 = vmatpush.msrb.mxu3 %v73_v0 }
 0x544   :  { %v514_v3 = vmul.f32 %v512_v2, %v512_v2 }
 0x545   :  { %608 = vmatpush.msrb.mxu3 %v72_v11 }
 0x546   :  { %v515_v4 = vsel %vm77_vm0, %v514_v3, 0.0 }
 0x547   :  { %516 = vadd.xlane.f32.xlu2 %v515_v4  ;;  %609 = vmatpush.msrb.mxu3 %v71_v12 }
 0x549   :  { %610 = vmatpush.msrb.mxu3 %v70_v18 }
 0x54b   :  { %611 = vmatpush.msrb.mxu3 %v69_v22 }
 0x54d   :  { %612 = vmatpush.msrb.mxu3 %v68_v40 }
 0x54f   :  { %613 = vmatpush.msrb.mxu3 %v67_v42 }
 0x5ba   :  { %v517_v14 = vpop.xlane.xlu2 %516 }
 0x5bb   :  { %v518_v17 = vmul.f32 %v517_v14, %v1404_v16 }
 0x5bd   :  { %v519_v21 = vadd.f32 1e-06, %v518_v17 }
 0x5bf   :  { %1251 = vrsqrt.f32 %v519_v21  ;;  %vm526_vm12 = vweird.f32 %v519_v21 }
 0x5c5   :  { %v1252_v23 = vpop.eup %1251 }
 0x5c6   :  { %v521_v24 = vmul.f32 %v1252_v23, %v519_v21  ;;  %vm527_vm11 = vweird.f32 %v1252_v23 }
 0x5c7   :  { %vm528_vm13 = vmor %vm526_vm12, %vm527_vm11 }
 0x5c8   :  { %v522_v33 = vmul.f32 %v1252_v23, %v521_v24 }
 0x5ca   :  { %v523_v27 = vmul.f32 0.5, %v522_v33 }
 0x5cc   :  { %v524_v28 = vsub.f32 1.5, %v523_v27 }
 0x5ce   :  { %v525_v30 = vmul.f32 %v1252_v23, %v524_v28 }
 0x5d0   :  { %v529_v35 = vsel %vm528_vm13, %v1252_v23, %v525_v30 }
 0x5d1   :  { %v530_v36 = vmul.f32 %v529_v35, %v512_v2 }
 0x5d3   :  { %v532_v38 = vmul.f32 %v531_v31, %v530_v36 }
 0x5d5   :  { %1156 = vmatmul.msk.f32.vlgmr.msrb.gmra.mxu1 %vm77_vm0, %v532_v38 }
 0x652   :  { %v569_v44 = vpop.f32.mrf.mxu1 }
 0x653   :  { %v572_v48 = vmax.f32 %v569_v44, 0.0 }
 0x655   :  { %v573_v26 = vmul.f32 %v572_v48, %v572_v48 }
 0x657   :  { %1174 = vmatmul.msk.f32.vlgmr.msrb.gmra.mxu3 %vm594_vm14, %v573_v26 }
 0x6da   :  { %v615_v51 = vpop.f32.mrf.mxu3 }
 0x6db   :  { %v1634_v52 = vadd.f32 %v615_v51, %v512_v2 }
 0x6dd   :  { %v618_v55 = vmul.f32 %v1634_v52, %v1634_v52 }
 0x6df   :  { %v619_v56 = vsel %vm77_vm0, %v618_v55, 0.0 }
 0x6e0   :  { %620 = vadd.xlane.f32.xlu0 %v619_v56 }
 0x753   :  { %v621_v63 = vpop.xlane.xlu0 %620 }
 0x754   :  { %v622_v2 = vmul.f32 %v621_v63, %v1404_v16 }
 0x756   :  { %v623_v3 = vadd.f32 1e-06, %v622_v2 }
 0x758   :  { %1253 = vrsqrt.f32 %v623_v3  ;;  %vm630_vm1 = vweird.f32 %v623_v3 }
 0x75e   :  { %v1254_v4 = vpop.eup %1253 }
 0x75f   :  { %v625_v5 = vmul.f32 %v1254_v4, %v623_v3  ;;  %vm631_vm15 = vweird.f32 %v1254_v4 }
 0x760   :  { %vm632_vm2 = vmor %vm630_vm1, %vm631_vm15 }
 0x761   :  { %v626_v6 = vmul.f32 %v1254_v4, %v625_v5 }
 0x763   :  { %v627_v1 = vmul.f32 0.5, %v626_v6 }
 0x765   :  { %v628_v7 = vsub.f32 1.5, %v627_v1 }
 0x767   :  { %v629_v8 = vmul.f32 %v1254_v4, %v628_v7 }
 0x769   :  { %v633_v0 = vsel %vm632_vm2, %v1254_v4, %v629_v8 }
 0x76a   :  { %v634_v11 = vmul.f32 %v633_v0, %v1634_v52 }
 0x76c   :  { %v636_v12 = vmul.f32 %v635_v10, %v634_v11 }
 0x76e   :  { %1175 = vmatmul.msk.f32.vlgmr.msra.gmra.mxu2 %vm77_vm0, %v636_v12 }
 0x7f1   :  { %v1676_v14 = vpop.f32.mrf.mxu2 }
 0x7f2   :  { %661 = vrot.lane.b32.xlu1 %v1676_v14, %s1310_s1  ;;  %v698_v17 = vmul.f32 %v1676_v14, %v1456_v41  ;;  %v692_v18 = vmul.f32 %v1676_v14, %v1432_v34  ;;  %v678_v21 = vmul.f32 %v1676_v14, %v1484_v49  ;;  %v699_v22 = vmul.f32 %v1676_v14, %v1428_v32 }
 0x7f3   :  { %v848_v41 = vmul.f32 %v1676_v14, %v1441_v37  ;;  %v804_v34 = vmul.f32 %v1676_v14, %v1451_v39  ;;  %v818_v49 = vmul.f32 %v1676_v14, %v1464_v43  ;;  %v664_v39 = vmul.f32 %v1676_v14, %v1379_v9 }
 0x7f4   :  { %856 = vrot.lane.b32.xlu2 %v698_v17, %s1311_s20  ;;  %v854_v27 = vmul.f32 %v1676_v14, %v1494_v53  ;;  %v816_v53 = vmul.f32 %v1676_v14, %v1496_v54 }
 0x7fa   :  { %694 = vrot.lane.b32.xlu1 %v692_v18, %s1306_s12 }
 0x7fc   :  { %682 = vrot.lane.b32.xlu2 %v678_v21, %s1311_s20 }
 0x802   :  { %701 = vrot.lane.b32.xlu1 %v699_v22, %s1311_s20 }
 0x80a   :  { %850 = vrot.lane.b32.xlu1 %v848_v41, %s1306_s12 }
 0x812   :  { %808 = vrot.lane.b32.xlu1 %v804_v34, %s1306_s12 }
 0x81a   :  { %822 = vrot.lane.b32.xlu1 %v818_v49, %s1311_s20 }
 0x84e   :  { %v857_v43 = vpop.permute.xlu2 %856 }
 0x84f   :  { %v859_v28 = vadd.f32 %v857_v43, %v854_v27 }
 0x864   :  { %v662_v23 = vpop.permute.xlu1 %661 }
 0x865   :  { %v805_v32 = vmul.f32 %v662_v23, %v1477_v46  ;;  %v819_v24 = vmul.f32 %v662_v23, %v1486_v50  ;;  %v665_v35 = vmul.f32 %v662_v23, %v1416_v20  ;;  %v679_v42 = vmul.f32 %v662_v23, %v1513_v13  ;;  %v683_v20 = vpop.permute.xlu2 %682 }
 0x866   :  { %v817_v44 = vmul.f32 %v662_v23, %v1519_v19  ;;  %v676_v13 = vmul.f32 %v1676_v14, %v1524_v25  ;;  %v677_v7 = vmul.f32 %v662_v23, %v1537_v45 }
 0x867   :  { %810 = vrot.lane.b32.xlu0 %v805_v32, %s1306_s12  ;;  %824 = vrot.lane.b32.xlu1 %v819_v24, %s1311_s20 }
 0x868   :  { %v688_v19 = vadd.f32 %v683_v20, %v676_v13 }
 0x86c   :  { %v695_v37 = vpop.permute.xlu1 %694 }
 0x86d   :  { %v697_v33 = vsub.f32 %v692_v18, %v695_v37 }
 0x86f   :  { %706 = vrot.lane.b32.xlu2 %v697_v33, %s1314_s23  ;;  %668 = vrot.lane.b32.xlu0 %v664_v39, %s1306_s12 }
 0x874   :  { %v702_v46 = vpop.permute.xlu1 %701 }
 0x875   :  { %v704_v50 = vadd.f32 %v702_v46, %v698_v17 }
 0x877   :  { %710 = vrot.lane.b32.xlu1 %v704_v50, %s1314_s23  ;;  %865 = vrot.lane.b32.xlu0 %v859_v28, %s1313_s22 }
 0x87c   :  { %v851_v30 = vpop.permute.xlu1 %850 }
 0x87d   :  { %v853_v31 = vsub.f32 %v848_v41, %v851_v30 }
 0x87f   :  { %861 = vrot.lane.b32.xlu1 %v853_v31, %s1313_s22  ;;  %670 = vrot.lane.b32.xlu0 %v665_v35, %s1306_s12  ;;  %s1135_s22 = sshll.u32 %s1844_s6, 4  ;;  %s1136_s22 = int_to_ptr.hbm [resolvable:$true] %s1135_s22 }
 0x884   :  { %v809_v9 = vpop.permute.xlu1 %808 }
 0x885   :  { %v814_v36 = vsub.f32 %v804_v34, %v809_v9 }
 0x887   :  { %832 = vrot.lane.b32.xlu2 %v814_v36, %s1315_s24 }
 0x88c   :  { %v823_v38 = vpop.permute.xlu1 %822 }
 0x88d   :  { %v828_v40 = vadd.f32 %v823_v38, %v816_v53 }
 0x88f   :  { %840 = vrot.lane.b32.xlu1 %v828_v40, %s1315_s24  ;;  %684 = vrot.lane.b32.xlu2 %v679_v42, %s1311_s20 }
 0x8c9   :  { %v707_v54 = vpop.permute.xlu2 %706 }
 0x8d9   :  { %v811_v48 = vpop.permute.xlu0 %810  ;;  %v825_v26 = vpop.permute.xlu1 %824 }
 0x8da   :  { %v815_v51 = vsub.f32 %v805_v32, %v811_v48  ;;  %v829_v55 = vadd.f32 %v825_v26, %v817_v44 }
 0x8dc   :  { %834 = vrot.lane.b32.xlu1 %v815_v51, %s1315_s24  ;;  %842 = vrot.lane.b32.xlu0 %v829_v55, %s1315_s24 }
 0x8e1   :  { %v669_v56 = vpop.permute.xlu0 %668  ;;  %v833_v63 = vpop.permute.xlu2 %832 }
 0x8e2   :  { %v674_v2 = vsub.f32 %v664_v39, %v669_v56 }
 0x8e4   :  { %v690_v6 = vsel %vm170_vm6, %v674_v2, %v688_v19 }
 0x8e9   :  { %v711_v3 = vpop.permute.xlu1 %710  ;;  %v866_v5 = vpop.permute.xlu0 %865 }
 0x8ea   :  { %v713_v4 = vsel %vm170_vm6, %v707_v54, %v711_v3  ;;  %v685_v1 = vpop.permute.xlu2 %684 }
 0x8eb   :  { %1176 = vmatpush.xpose.msk.msra.mxu1 %vm204_vm5, %v713_v4  ;;  %v689_v25 = vadd.f32 %v685_v1, %v677_v7 }
 0x8ee   :  { %1177 = vmatmul.msk.f32.vlgmr.msra.gmra.mxu1 %vm204_vm5, %v690_v6 }
 0x8f1   :  { %v862_v8 = vpop.permute.xlu1 %861  ;;  %v671_v0 = vpop.permute.xlu0 %670 }
 0x8f2   :  { %v868_v10 = vsel %vm170_vm6, %v862_v8, %v866_v5  ;;  %v675_v11 = vsub.f32 %v665_v35, %v671_v0 }
 0x8f3   :  { %1181 = vmatpush.xpose.msk.msra.mxu0 %vm204_vm5, %v868_v10 }
 0x8f4   :  { %v691_v12 = vsel %vm170_vm6, %v675_v11, %v689_v25 }
 0x8f6   :  { %1178 = vmatmul.msk.f32.gmra.mxu1 %vm204_vm5, %v691_v12 }
 0x901   :  { %v841_v17 = vpop.permute.xlu1 %840 }
 0x902   :  { %v846_v18 = vsel %vm170_vm6, %v833_v63, %v841_v17 }
 0x903   :  { %1182 = vmatmul.msk.f32.vlgmr.msra.gmra.mxu0 %vm204_vm5, %v846_v18 }
 0x94e   :  { %v835_v21 = vpop.permute.xlu1 %834  ;;  %v843_v22 = vpop.permute.xlu0 %842 }
 0x94f   :  { %v847_v45 = vsel %vm170_vm6, %v835_v21, %v843_v22  ;;  %vm1082_vm6 = vcmask 261127  }
 0x950   :  { %1183 = vmatmul.msk.f32.gmra.mxu0 %vm204_vm5, %v847_v45  ;;  %v1165_v45 = vld [vmem:[%s1842_s4 + $0x78] sm:$0xff] }
 0x951   :  { %989 = vmatpush.msrb.mxu1 %v1165_v45 }
 0x96b   :  { %v740_v41 = vpop.f32.mrf.mxu1 }
 0x96c   :  { %v746_v34 = vmul.f32 0.35355338, %v740_v41  ;;  %v1164_v41 = vld [vmem:[%s1842_s4 + $0x70] sm:$0xff] }
 0x96d   :  { %990 = vmatpush.msrb.mxu1 %v1164_v41 }
 0x96e   :  { %v748_v49 = vsel %vm1545_vm7, %v746_v34, -1e+30 }
 0x96f   :  { %v750_v23 = vsel %vm204_vm5, %v748_v49, -inf  ;;  %991 = vmatpush.msrb.mxu1 %v1163_v57 }
 0x970   :  { %751 = vmax.xlane.f32.xlu2 %v750_v23 }
 0x971   :  { %992 = vmatpush.msrb.mxu1 %v1162_v58 }
 0x973   :  { %v743_v32 = vpop.f32.mrf.mxu1 }
 0x974   :  { %v747_v24 = vmul.f32 0.35355338, %v743_v32 }
 0x976   :  { %v749_v37 = vsel %vm1555_vm8, %v747_v24, -1e+30 }
 0x977   :  { %v753_v33 = vsel %vm204_vm5, %v749_v37, -inf }
 0x978   :  { %754 = vmax.xlane.f32.xlu0 %v753_v33 }
 0x980   :  { %v895_v39 = vpop.f32.mrf.mxu0 }
 0x981   :  { %v901_v43 = vmul.f32 0.35355338, %v895_v39 }
 0x983   :  { %v903_v27 = vsel %vm1545_vm7, %v901_v43, -1e+30 }
 0x984   :  { %v905_v46 = vsel %vm204_vm5, %v903_v27, -inf }
 0x985   :  { %906 = vmax.xlane.f32.xlu1 %v905_v46 }
 0x9cd   :  { %v898_v28 = vpop.f32.mrf.mxu0 }
 0x9ce   :  { %v902_v50 = vmul.f32 0.35355338, %v898_v28 }
 0x9d0   :  { %v904_v30 = vsel %vm1555_vm8, %v902_v50, -1e+30  ;;  %v1173_v50 = vld [vmem:[%s1842_s4 + $0xb8] sm:$0xff] }
 0x9d1   :  { %v908_v31 = vsel %vm204_vm5, %v904_v30, -inf  ;;  %1068 = vmatpush.msrb.mxu0 %v1173_v50 }
 0x9d2   :  { %909 = vmax.xlane.f32.xlu2 %v908_v31  ;;  %v1170_v31 = vld [vmem:[%s1842_s4 + $0xa0] sm:$0xff] }
 0x9e3   :  { %v752_v35 = vpop.xlane.xlu2 %751 }
 0x9e4   :  { %v756_v9 = vsub.f32 %v748_v49, %v752_v35 }
 0x9e6   :  { %v758_v36 = vmul.f32 1.442695, %v756_v9 }
 0x9e8   :  { %1255 = vpow2.f32 %v758_v36  ;;  %v1169_v36 = vld [vmem:[%s1842_s4 + $0x98] sm:$0xff] }
 0x9eb   :  { %v755_v53 = vpop.xlane.xlu0 %754 }
 0x9ec   :  { %v757_v38 = vsub.f32 %v749_v37, %v755_v53 }
 0x9ee   :  { %v1256_v40 = vpop.eup %1255  ;;  %v760_v47 = vmul.f32 1.442695, %v757_v38  ;;  %v1168_v38 = vld [vmem:[%s1842_s4 + $0x90] sm:$0xff] }
 0x9ef   :  { %v762_v42 = vsel %vm204_vm5, %v1256_v40, 0.0 }
 0x9f0   :  { %1257 = vpow2.f32 %v760_v47  ;;  %763 = vadd.xlane.f32.xlu1 %v762_v42 }
 0x9f6   :  { %v1258_v20 = vpop.eup %1257 }
 0x9f7   :  { %v765_v44 = vsel %vm204_vm5, %v1258_v20, 0.0 }
 0x9f8   :  { %v907_v29 = vpop.xlane.xlu1 %906  ;;  %766 = vadd.xlane.f32.xlu2 %v765_v44 }
 0x9f9   :  { %v911_v48 = vsub.f32 %v903_v27, %v907_v29 }
 0x9fb   :  { %v913_v26 = vmul.f32 1.442695, %v911_v48  ;;  %v1014_v48 = vperm.slane %v1671_v15, 1 }
 0x9fd   :  { %1259 = vpow2.f32 %v913_v26 }
 0xa03   :  { %v1260_v51 = vpop.eup %1259 }
 0xa04   :  { %v917_v55 = vsel %vm204_vm5, %v1260_v51, 0.0 }
 0xa05   :  { %918 = vadd.xlane.f32.xlu0 %v917_v55 }
 0xa09   :  { %772 = vrot.lane.b32.xlu1 %v1676_v14, %s1316_s0 }
 0xa10   :  { %927 = vrot.lane.b32.xlu2 %v1676_v14, %s1317_s25 }
 0xa45   :  { %v910_v54 = vpop.xlane.xlu2 %909 }
 0xa46   :  { %v912_v56 = vsub.f32 %v904_v30, %v910_v54  ;;  %v1171_v30 = vld [vmem:[%s1842_s4 + $0xa8] sm:$0xff] }
 0xa47   :  { %v1167_v54 = vld [vmem:[%s1842_s4 + $0x88] sm:$0xff] }
 0xa48   :  { %v915_v63 = vmul.f32 1.442695, %v912_v56  ;;  %v1166_v56 = vld [vmem:[%s1842_s4 + $0x80] sm:$0xff] }
 0xa4a   :  { %1261 = vpow2.f32 %v915_v63 }
 0xa50   :  { %v1262_v13 = vpop.eup %1261 }
 0xa51   :  { %v920_v2 = vsel %vm204_vm5, %v1262_v13, 0.0 }
 0xa52   :  { %921 = vadd.xlane.f32.xlu0 %v920_v2 }
 0xa63   :  { %v764_v4 = vpop.xlane.xlu1 %763 }
 0xa64   :  { %1263 = vrcp.f32 %v764_v4 }
 0xa6a   :  { %v1264_v19 = vpop.eup %1263 }
 0xa6b   :  { %v767_v3 = vpop.xlane.xlu2 %766  ;;  %v770_v1 = vmul.f32 %v1264_v19, %v1256_v40  ;;  %v1102_v19 = vld [vmem:[%s1843_s5 + $0x18] sm:$0xff] }
 0xa73   :  { %v928_v5 = vpop.permute.xlu2 %927 }
 0xa74   :  { %951 = vmatpush.msrb.mxu2 %v928_v5 }
 0xa76   :  { %1119 = vmatpush.msra.mxu2 %v1102_v19 }
 0xa78   :  { %v919_v6 = vpop.xlane.xlu0 %918 }
 0xa79   :  { %1265 = vrcp.f32 %v919_v6  ;;  %v1101_v6 = vld [vmem:[%s1843_s5 + $0x10] sm:$0xff] }
 0xa7a   :  { %1267 = vrcp.f32 %v767_v3  ;;  %1120 = vmatpush.msra.mxu2 %v1101_v6 }
 0xa7b   :  { %v773_v7 = vpop.permute.xlu1 %772 }
 0xa7c   :  { %796 = vmatpush.msra.mxu3 %v773_v7  ;;  %v1099_v7 = vld [vmem:[%s1843_s5] sm:$0xff] }
 0xa7d   :  { %1179 = vmatmul.msk.f32.vlgmr.msra.gmra.mxu3 %vm204_vm5, %v770_v1  ;;  %v1100_v1 = vld [vmem:[%s1843_s5 + $0x8] sm:$0xff]  ;;  %s1321_s5 = smov [#allocation2]  }
 0xa7e   :  { %1121 = vmatpush.msra.mxu2 %v1100_v1 }
 0xa7f   :  { %v1266_v14 = vpop.eup %1265 }
 0xa80   :  { %v1268_v8 = vpop.eup %1267  ;;  %v925_v10 = vmul.f32 %v1266_v14, %v1260_v51  ;;  %1122 = vmatpush.msra.mxu2 %v1099_v7 }
 0xa81   :  { %v771_v0 = vmul.f32 %v1268_v8, %v1258_v20 }
 0xa82   :  { %1184 = vmatmul.msk.f32.vlgmr.msrb.gmra.mxu2 %vm204_vm5, %v925_v10 }
 0xa85   :  { %1180 = vmatmul.msk.f32.gmra.mxu3 %vm204_vm5, %v771_v0 }
 0xac5   :  { %v922_v25 = vpop.xlane.xlu0 %921 }
 0xac6   :  { %1269 = vrcp.f32 %v922_v25 }
 0xacc   :  { %v1270_v11 = vpop.eup %1269 }
 0xacd   :  { %v926_v12 = vmul.f32 %v1270_v11, %v1262_v13 }
 0xacf   :  { %1185 = vmatmul.msk.f32.gmra.mxu2 %vm204_vm5, %v926_v12 }
 0xb00   :  { %v798_v17 = vpop.f32.mrf.mxu3 }
 0xb05   :  { %v953_v18 = vpop.f32.mrf.mxu2 }
 0xb06   :  { %964 = vrot.lane.b32.xlu1 %v953_v18, %s1307_s13  ;;  %s1133_s13 = sshll.u32 %s1321_s5, 4  ;;  %s1134_s13 = int_to_ptr.vmem [resolvable:$true] %s1133_s13 }
 0xb08   :  { %v801_v21 = vpop.f32.mrf.mxu3 }
 0xb09   :  { %960 = vrot.lane.b32.xlu0 %v801_v21, %s1318_s26 }
 0xb0e   :  { %1222 = vrot.lane.b32.xlu1 %v1221_v59, %s1320_s14 }
 0xb52   :  { %v956_v22 = vpop.f32.mrf.mxu2 }
 0xb53   :  { %968 = vrot.lane.b32.xlu2 %v956_v22, %s1319_s27 }
 0xb5b   :  { %1227 = vrot.lane.b32.xlu2 %v1226_v62, %s1320_s14 }
 0xb78   :  { %v965_v61 = vpop.permute.xlu1 %964 }
 0xb7b   :  { %v961_v59 = vpop.permute.xlu0 %960 }
 0xb7c   :  { %v971_v60 = vsel %vm204_vm5, %v798_v17, %v961_v59 }
 0xb7d   :  { %v972_v34 = vsel %vm487_vm9, %v971_v60, %v965_v61 }
 0xb80   :  { %v1223_v33 = vpop.permute.xlu1 %1222 }
 0xb81   :  { %v1224_v39 = vunpack.i.l.bf16 %v1223_v33  ;;  %v1225_v43 = vunpack.i.h.bf16 %v1223_v33 }
 0xb83   :  { %1047 = vmatpush.msrb.mxu3 %v1224_v39 }
 0xb85   :  { %1048 = vmatpush.msrb.mxu3 %v1225_v43 }
 0xbad   :  { %v969_v62 = vpop.permute.xlu2 %968 }
 0xbae   :  { %v973_v49 = vsel %vm489_vm10, %v972_v34, %v969_v62 }
 0xbaf   :  { %1186 = vmatmul.msk.f32.vlgmr.msrb.gmra.mxu1 %vm77_vm0, %v973_v49 }
 0xbb5   :  { %v1228_v27 = vpop.permute.xlu2 %1227 }
 0xbb6   :  { %v1229_v46 = vunpack.i.l.bf16 %v1228_v27  ;;  %v1230_v28 = vunpack.i.h.bf16 %v1228_v27 }
 0xbb8   :  { %1049 = vmatpush.msrb.mxu3 %v1229_v46 }
 0xbba   :  { %1050 = vmatpush.msrb.mxu3 %v1230_v28 }
 0xc2c   :  { %v994_v23 = vpop.f32.mrf.mxu1 }
 0xc2d   :  { %v995_v32 = vadd.f32 %v994_v23, %v1634_v52  ;;  %v1172_v52 = vld [vmem:[%s1842_s4 + $0xb0] sm:$0xff] }
 0xc2e   :  { %1069 = vmatpush.msrb.mxu0 %v1172_v52 }
 0xc2f   :  { %v997_v24 = vmul.f32 %v995_v32, %v995_v32 }
 0xc30   :  { %1070 = vmatpush.msrb.mxu0 %v1171_v30 }
 0xc31   :  { %v998_v37 = vsel %vm77_vm0, %v997_v24, 0.0 }
 0xc32   :  { %999 = vadd.xlane.f32.xlu0 %v998_v37  ;;  %1071 = vmatpush.msrb.mxu0 %v1170_v31 }
 0xc34   :  { %1072 = vmatpush.msrb.mxu0 %v1169_v36 }
 0xc36   :  { %1073 = vmatpush.msrb.mxu0 %v1168_v38 }
 0xc38   :  { %1074 = vmatpush.msrb.mxu0 %v1167_v54 }
 0xc3a   :  { %1075 = vmatpush.msrb.mxu0 %v1166_v56 }
 0xca5   :  { %v1000_v35 = vpop.xlane.xlu0 %999 }
 0xca6   :  { %v1001_v9 = vmul.f32 %v1000_v35, %v1404_v16 }
 0xca8   :  { %v1002_v53 = vadd.f32 1e-06, %v1001_v9 }
 0xcaa   :  { %1271 = vrsqrt.f32 %v1002_v53  ;;  %vm1009_vm4 = vweird.f32 %v1002_v53 }
 0xcb0   :  { %v1272_v40 = vpop.eup %1271 }
 0xcb1   :  { %v1004_v47 = vmul.f32 %v1272_v40, %v1002_v53  ;;  %vm1010_vm3 = vweird.f32 %v1272_v40 }
 0xcb2   :  { %vm1011_vm5 = vmor %vm1009_vm4, %vm1010_vm3 }
 0xcb3   :  { %v1005_v42 = vmul.f32 %v1272_v40, %v1004_v47 }
 0xcb5   :  { %v1006_v20 = vmul.f32 0.5, %v1005_v42 }
 0xcb7   :  { %v1007_v44 = vsub.f32 1.5, %v1006_v20 }
 0xcb9   :  { %v1008_v29 = vmul.f32 %v1272_v40, %v1007_v44 }
 0xcbb   :  { %v1012_v26 = vsel %vm1011_vm5, %v1272_v40, %v1008_v29 }
 0xcbc   :  { %v1013_v51 = vmul.f32 %v1012_v26, %v995_v32 }
 0xcbe   :  { %v1015_v55 = vmul.f32 %v1014_v48, %v1013_v51 }
 0xcc0   :  { %1187 = vmatmul.msk.f32.vlgmr.msrb.gmra.mxu3 %vm77_vm0, %v1015_v55 }
 0xd43   :  { %v1052_v63 = vpop.f32.mrf.mxu3 }
 0xd44   :  { %v1055_v13 = vmax.f32 %v1052_v63, 0.0 }
 0xd46   :  { %v1056_v2 = vmul.f32 %v1055_v13, %v1055_v13 }
 0xd48   :  { %1188 = vmatmul.msk.f32.vlgmr.msrb.gmra.mxu0 %vm594_vm14, %v1056_v2 }
 0xdc5   :  { %v1077_v15 = vpop.f32.mrf.mxu0 }
 0xdc6   :  { %v1080_v3 = vadd.f32 %v1077_v15, %v995_v32 }
 0xdc8   :  { %v1081_v4 = vmul.f32 %v1080_v3, %v1080_v3 }
 0xdca   :  { %v1083_v5 = vsel %vm1082_vm6, %v1081_v4, 0.0 }
 0xdcb   :  { %1084 = vadd.xlane.f32.xlu1 %v1083_v5 }
 0xe3e   :  { %v1085_v14 = vpop.xlane.xlu1 %1084 }
 0xe3f   :  { %v1086_v8 = vmul.f32 %v1085_v14, %v1404_v16 }
 0xe41   :  { %v1087_v10 = vadd.f32 1e-06, %v1086_v8 }
 0xe43   :  { %1273 = vrsqrt.f32 %v1087_v10  ;;  %vm1094_vm8 = vweird.f32 %v1087_v10 }
 0xe49   :  { %v1274_v0 = vpop.eup %1273 }
 0xe4a   :  { %v1089_v25 = vmul.f32 %v1274_v0, %v1087_v10  ;;  %vm1095_vm7 = vweird.f32 %v1274_v0 }
 0xe4b   :  { %vm1096_vm9 = vmor %vm1094_vm8, %vm1095_vm7 }
 0xe4c   :  { %v1090_v11 = vmul.f32 %v1274_v0, %v1089_v25 }
 0xe4e   :  { %v1091_v12 = vmul.f32 0.5, %v1090_v11 }
 0xe50   :  { %v1092_v17 = vsub.f32 1.5, %v1091_v12 }
 0xe52   :  { %v1093_v18 = vmul.f32 %v1274_v0, %v1092_v17 }
 0xe54   :  { %v1097_v21 = vsel %vm1096_vm9, %v1274_v0, %v1093_v18 }
 0xe55   :  { %v1098_v22 = vmul.f32 %v1097_v21, %v1080_v3 }
 0xe57   :  { %v1104_v45 = vrot.slane %v1098_v22, 7 }
 0xe59   :  { %1189 = vmatmul.msk.f32.vlgmr.msra.gmra.mxu2 %vm77_vm0, %v1104_v45 }
 0xedc   :  { %v1124_v16 = vpop.f32.mrf.mxu2 }
 0xedd   :  { %1127 = vst [vmem:[#allocation2] sm:$0x1] %v1124_v16 }
 0xede   :  { %1138 = dma.vmem_to_hbm [thread:$0]  %s1134_s13, 16, %s1136_s22, [#allocation3]  }
 0xedf   :  { %1299 = dma.done.wait [#allocation3], 16  }
 0xee0   :  { %1300 = vsyncadd [#allocation3], 4294967280 }
 0xee1   :  { %1143 = vsyncpa [#allocation3], 1 }

</bundles_post_ra>
